<compile_context>
chip_gen: v7x
topology: tpu7x:2x2x1
jax: 0.10.0
libtpu: 0.0.40
codegen_flags: <defaults>
</compile_context>

<pallas_src>
import math
import functools

import jax
import jax.numpy as jnp
from jax import lax
from jax.experimental import pallas as pl
from jax.experimental.pallas import tpu as pltpu

# ----------------------------- configuration --------------------------------
EMBED_DIM = 32
NUM_HEADS = 4
HEAD_DIM = EMBED_DIM // NUM_HEADS
TGT_LEN = 8
SRC_LEN = 8
BSZ = 2

ATTENTION_EPS = 1e-6       # args.attention_eps (used in exclusive_cumprod AND clamp)
MASS_PRESERVATION = True   # args.mass_preservation (default True)
ENERGY_BIAS = -2.0         # args.energy_bias=True, args.energy_bias_init=-2.0
SCALING = HEAD_DIM ** -0.5

BE = BSZ * EMBED_DIM                        # packed (b, e) lane width        (= 64)
L = BSZ * NUM_HEADS * SRC_LEN               # packed (b, h, s) lane width     (= 64)
LP = ((L + 127) // 128) * 128               # L padded to full vreg lanes     (= 128)
OUT_W = ((BE + 2 * L + 127) // 128) * 128   # fused output slab lane width    (= 256)
WB_ROWS = 4 * BE + 32                       # 4 block-diag weights + 8-aligned bias rows


def _mod(x, d):
    """Modulo of a non-negative int array by a static positive int."""
    if d & (d - 1) == 0:
        return x & (d - 1)
    return x % d


# ------------------------ fused forward kernel --------------------------------
def _monotonic_fused_kernel(
    q_ref, k_ref, v_ref, wb_ref, cb_ref, out_ref, alpha_scr,
    *, T, S, B, H, Hd, scaling, energy_bias, eps, mass_preservation,
):
    f32 = jnp.float32
    E = H * Hd
    BE_ = B * E
    L_ = B * H * S
    LP_ = cb_ref.shape[0]
    out_w = out_ref.shape[1]

    # ---- packed parameter slab (block-diagonal-over-batch weights + biases) ----
    wq = wb_ref[0 * BE_:1 * BE_, :]
    wk = wb_ref[1 * BE_:2 * BE_, :]
    wv = wb_ref[2 * BE_:3 * BE_, :]
    wo = wb_ref[3 * BE_:4 * BE_, :]
    bq = wb_ref[4 * BE_ + 0:4 * BE_ + 1, :]
    bk = wb_ref[4 * BE_ + 8:4 * BE_ + 9, :]
    bv = wb_ref[4 * BE_ + 16:4 * BE_ + 17, :]
    bo = wb_ref[4 * BE_ + 24:4 * BE_ + 25, :]

    # ---- packed constant slab ---------------------------------------------------
    # mask_v[i, j] = 1 iff head-block(i over (b,h,s)) == head-block(j over (b,h,d));
    #                rows i >= L (lane padding) are all zero.
    # smat[i, s]   = 1 iff (i % S) == s   (source-position selector).
    mask_v = cb_ref[:, 0:BE_]           # (LP, BE)
    smat = cb_ref[:, BE_:BE_ + S]       # (LP, S)

    # ---- input projections (weights block-diagonal; layout (T|S, B*E)) ----------
    qp = jnp.dot(q_ref[...], wq, preferred_element_type=f32) + bq   # (T, BE)
    kp = jnp.dot(k_ref[...], wk, preferred_element_type=f32) + bk   # (S, BE)
    vp = jnp.dot(v_ref[...], wv, preferred_element_type=f32) + bv   # (S, BE)
    # (q scaling by head_dim**-0.5 is folded into the sigmoid argument below.)

    # ---- block-diagonal expansion of K / V along the packed (b,h,s) axis --------
    # k_big[i, j] = kp[i % S, j] restricted to matching head-block; same for v_big.
    k_big = jnp.dot(smat, kp, preferred_element_type=f32) * mask_v  # (LP, BE)
    v_big = jnp.dot(smat, vp, preferred_element_type=f32) * mask_v  # (LP, BE)

    # ---- monotonic energies: ONE matmul into the packed (T, LP) layout ----------
    # energy[t, (b,h,s)] = sum_d qp[t,(b,h,d)] * kp[s,(b,h,d)]   (pad lanes -> 0)
    energy = lax.dot_general(qp, k_big, (((1,), (1,)), ((), ())),
                             preferred_element_type=f32)            # (T, LP)

    # p_choose (eval path; lanes >= L are padding and never read back).
    # TODO(synk): training-time discreteness noise (flat/gaussian) and the
    # key_padding_mask / attn_mask / incremental-inference branches are not implemented.
    p = jax.nn.sigmoid(scaling * energy + energy_bias)               # (T, LP)

    # ---- segmented (per S-lane source block) prefix sums via lane rolls ---------
    s_lane = _mod(lax.broadcasted_iota(jnp.int32, (1, LP_), 1), S)
    seg_steps = []
    sh = 1
    while sh < S:
        seg_steps.append((sh, (s_lane >= sh).astype(f32)))
        sh *= 2

    def seg_cumsum(x):
        # inclusive prefix sum along lanes within each S-lane block (XLU/VPU only)
        y = x
        for shift, m in seg_steps:
            y = y + pltpu.roll(y, shift, axis=1) * m
        return y

    # fairseq exclusive_cumprod(1-p, dim=2, eps=self.eps):
    #   prepend ones, exp(cumsum(log(x + eps))), drop last
    # => entry j = (1+eps) * prod_{m<j}(1 - p_m + eps)
    log_1mp = jnp.log((1.0 - p) + eps)
    excl_log = seg_cumsum(log_1mp) - log_1mp                         # exclusive cumsum
    cumprod_1mp = jnp.exp(excl_log + math.log(1.0 + eps))
    cumprod_1mp_clamp = jnp.clip(cumprod_1mp, eps, 1.0)
    recip_clamp = 1.0 / cumprod_1mp_clamp                            # hoisted out of loop

    # ---- expected_alignment_train recurrence over target steps ------------------
    # alpha_i = clamp(p_i * cumprod_1mp_i * cumsum_s(alpha_{i-1} / clamp_i), 0, 1)
    prev = (s_lane == 0).astype(f32)                                 # init attention @ s=0
    for i in range(T):                                               # T small & static
        cs = seg_cumsum(prev * recip_clamp[i:i + 1, :])              # (1, LP) rolls, no MXU
        a_i = jnp.clip(p[i:i + 1, :] * cumprod_1mp[i:i + 1, :] * cs, 0.0, 1.0)
        alpha_scr[i:i + 1, :] = a_i
        prev = a_i

    alpha = alpha_scr[...]                                           # (T, LP)

    # ---- mass preservation (no key_padding_mask path) ----------------------------
    if mass_preservation:
        inc = seg_cumsum(alpha)
        partial = pltpu.roll(inc, 1, axis=1)       # at s == S-1: sum over s' < S-1
        residual = 1.0 - jnp.clip(partial, 0.0, 1.0)
        s_full = _mod(lax.broadcasted_iota(jnp.int32, (T, LP_), 1), S)
        alpha = jnp.where(s_full == S - 1, residual, alpha)

    # ---- beta = alpha (hard monotonic); attn = beta @ v_proj; out_proj ----------
    attn_te = jnp.dot(alpha, v_big, preferred_element_type=f32)      # (T, BE)
    out_te = jnp.dot(attn_te, wo, preferred_element_type=f32) + bo   # (T, BE)

    # ---- single lane-dense output slab: dense (T, 256) HBM writeback ------------
    out_ref[:, 0:BE_] = out_te
    out_ref[:, BE_:BE_ + L_] = alpha[:, 0:L_]
    out_ref[:, BE_ + L_:BE_ + 2 * L_] = p[:, 0:L_]
    if out_w > BE_ + 2 * L_:
        out_ref[:, BE_ + 2 * L_:] = jnp.zeros((T, out_w - BE_ - 2 * L_), f32)


def _build_fused_call(T, S, B, E, H, Hd):
    be = B * E
    l = B * H * S
    lp = ((l + 127) // 128) * 128
    out_w = ((be + 2 * l + 127) // 128) * 128

    kernel = functools.partial(
        _monotonic_fused_kernel,
        T=T, S=S, B=B, H=H, Hd=Hd,
        scaling=SCALING, energy_bias=ENERGY_BIAS,
        eps=ATTENTION_EPS, mass_preservation=MASS_PRESERVATION,
    )

    def full(shape):
        return pl.BlockSpec(shape, lambda i, n=len(shape): (0,) * n)

    return pl.pallas_call(
        kernel,
        out_shape=jax.ShapeDtypeStruct((T, out_w), jnp.float32),
        grid=(1,),
        in_specs=[
            full((T, be)),                # q, rows = t, lanes = (b, e)
            full((S, be)),                # k
            full((S, be)),                # v
            full((4 * be + 32, be)),      # packed block-diag weights + biases
            full((lp, be + S)),           # packed mask_v | smat constants
        ],
        out_specs=full((T, out_w)),
        scratch_shapes=[pltpu.VMEM((T, lp), jnp.float32)],   # alpha rows
        compiler_params=pltpu.CompilerParams(dimension_semantics=("arbitrary",)),
    )


# ------------------------------ full forward ---------------------------------
@jax.jit
def monotonic_attention_forward(packed, query, key, value):
    # layout: query (tgt_len, bsz, embed_dim); key/value (src_len, bsz, embed_dim)
    t, b, e = query.shape
    s = key.shape[0]
    h = NUM_HEADS
    be = b * e
    l = b * h * s

    fused = _build_fused_call(t, s, b, e, h, HEAD_DIM)
    slab = fused(
        query.reshape(t, be),            # free reshapes only — no wrapper transposes
        key.reshape(s, be),
        value.reshape(s, be),
        packed["wb"],
        packed["cb"],
    )

    attn = slab[:, :be].reshape(t, b, e)
    alpha = slab[:, be:be + l].reshape(t, b, h, s).transpose(1, 2, 0, 3)       # (B,H,T,S)
    p_choose = slab[:, be + l:be + 2 * l].reshape(t, b, h, s).transpose(1, 2, 0, 3)
    beta = alpha                                                               # hard monotonic
    return attn, {"alpha": alpha, "beta": beta, "p_choose": p_choose}


# ------------------------------ parameter packing ------------------------------
def init_params(key):
    # Weights stored pre-transposed, i.e. (In, Out): y = x @ w + b.
    ks = jax.random.split(key, 8)

    def w(k):
        return jax.random.normal(k, (EMBED_DIM, EMBED_DIM), jnp.float32) * 0.1

    def bvec(k):
        return jax.random.normal(k, (1, EMBED_DIM), jnp.float32) * 0.01

    return {
        "q_wt": w(ks[0]), "q_b": bvec(ks[1]),
        "k_wt": w(ks[2]), "k_b": bvec(ks[3]),
        "v_wt": w(ks[4]), "v_b": bvec(ks[5]),
        "out_wt": w(ks[6]), "out_b": bvec(ks[7]),
    }


def pack_params(params):
    """One-time (per weight set) packing into the two kernel constant slabs."""
    B, E, H, Hd, S = BSZ, EMBED_DIM, NUM_HEADS, HEAD_DIM, SRC_LEN
    eye_b = jnp.eye(B, dtype=jnp.float32)

    def bd(w):                    # (E, E) -> block-diagonal over batch (BE, BE)
        return jnp.kron(eye_b, w)

    def tiled_bias(b):            # (1, E) -> (BE,)
        return jnp.tile(b, (1, B))[0]

    wb = jnp.zeros((WB_ROWS, BE), jnp.float32)
    wb = wb.at[0 * BE:1 * BE].set(bd(params["q_wt"]))
    wb = wb.at[1 * BE:2 * BE].set(bd(params["k_wt"]))
    wb = wb.at[2 * BE:3 * BE].set(bd(params["v_wt"]))
    wb = wb.at[3 * BE:4 * BE].set(bd(params["out_wt"]))
    wb = wb.at[4 * BE + 0].set(tiled_bias(params["q_b"]))
    wb = wb.at[4 * BE + 8].set(tiled_bias(params["k_b"]))
    wb = wb.at[4 * BE + 16].set(tiled_bias(params["v_b"]))
    wb = wb.at[4 * BE + 24].set(tiled_bias(params["out_b"]))

    i_lp = jnp.arange(LP)
    j_be = jnp.arange(BE)
    mask_v = ((i_lp[:, None] // S) == (j_be[None, :] // Hd)).astype(jnp.float32)  # (LP, BE)
    smat = ((i_lp[:, None] % S) == jnp.arange(S)[None, :]).astype(jnp.float32)    # (LP, S)
    cb = jnp.concatenate([mask_v, smat], axis=1)                                  # (LP, BE+S)
    return {"wb": wb, "cb": cb}


# ------------------------------ pure-JAX reference -----------------------------
def _reference_forward(params, query, key, value):
    """Plain-JAX replica of the fairseq hard-monotonic forward (eval, unmasked)."""
    t, b, e = query.shape
    s = key.shape[0]
    h, hd = NUM_HEADS, HEAD_DIM
    eps = ATTENTION_EPS

    q = query @ params["q_wt"] + params["q_b"][0]
    k = key @ params["k_wt"] + params["k_b"][0]
    v = value @ params["v_wt"] + params["v_b"][0]

    def heads(x, length):
        return x.reshape(length, b * h, hd).transpose(1, 0, 2)     # (b*h, len, hd)

    qh, kh, vh = heads(q, t), heads(k, s), heads(v, s)
    energy = jnp.einsum("ntd,nsd->nts", qh, kh)
    p = jax.nn.sigmoid(SCALING * energy + ENERGY_BIAS)

    ones = jnp.ones_like(p[:, :, :1])
    cp = jnp.exp(jnp.cumsum(jnp.log(jnp.concatenate([ones, 1.0 - p], axis=2) + eps),
                            axis=2))[:, :, :-1]
    cp_clamp = jnp.clip(cp, eps, 1.0)

    prev = jnp.zeros((b * h, s), jnp.float32).at[:, 0].set(1.0)
    rows = []
    for i in range(t):
        a_i = jnp.clip(
            p[:, i] * cp[:, i] * jnp.cumsum(prev / cp_clamp[:, i], axis=1), 0.0, 1.0)
        rows.append(a_i)
        prev = a_i
    alpha = jnp.stack(rows, axis=1)                                 # (b*h, t, s)
    if MASS_PRESERVATION:
        residual = 1.0 - jnp.clip(alpha[:, :, :-1].sum(-1), 0.0, 1.0)
        alpha = alpha.at[:, :, -1].set(residual)

    attn = jnp.einsum("nts,nsd->ntd", alpha, vh)
    attn = attn.transpose(1, 0, 2).reshape(t, b, e)
    out = attn @ params["out_wt"] + params["out_b"][0]
    return out, alpha.reshape(b, h, t, s), p.reshape(b, h, t, s)


if __name__ == "__main__":
    root = jax.random.PRNGKey(0)
    k_p, k_q, k_k, k_v = jax.random.split(root, 4)

    params = init_params(k_p)
    packed = pack_params(params)

    query = jax.random.normal(k_q, (TGT_LEN, BSZ, EMBED_DIM), jnp.float32)
    key_in = jax.random.normal(k_k, (SRC_LEN, BSZ, EMBED_DIM), jnp.float32)
    value = jax.random.normal(k_v, (SRC_LEN, BSZ, EMBED_DIM), jnp.float32)

    attn, aux = monotonic_attention_forward(packed, query, key_in, value)
    jax.block_until_ready((attn, aux))

    assert attn.shape == (TGT_LEN, BSZ, EMBED_DIM)
    assert aux["alpha"].shape == (BSZ, NUM_HEADS, TGT_LEN, SRC_LEN)
    assert aux["beta"].shape == (BSZ, NUM_HEADS, TGT_LEN, SRC_LEN)
    assert aux["p_choose"].shape == (BSZ, NUM_HEADS, TGT_LEN, SRC_LEN)
    assert bool(jnp.isfinite(attn).all()) and bool(jnp.isfinite(aux["alpha"]).all())

    ref_out, ref_alpha, ref_p = _reference_forward(params, query, key_in, value)
    assert bool(jnp.allclose(attn, ref_out, atol=2e-3, rtol=2e-3))
    assert bool(jnp.allclose(aux["alpha"], ref_alpha, atol=2e-3, rtol=2e-3))
    assert bool(jnp.allclose(aux["p_choose"], ref_p, atol=2e-3, rtol=2e-3))

    print("KERNEL_OK")
</pallas_src>

<mosaic_0001>
module attributes {stable_mosaic.version = 11 : i64} {
  func.func @_monotonic_fused_kernel(%arg0: i32, %arg1: memref<8x64xf32, #tpu.memory_space<vmem>>, %arg2: memref<8x64xf32, #tpu.memory_space<vmem>>, %arg3: memref<8x64xf32, #tpu.memory_space<vmem>>, %arg4: memref<288x64xf32, #tpu.memory_space<vmem>>, %arg5: memref<128x72xf32, #tpu.memory_space<vmem>>, %arg6: memref<8x256xf32, #tpu.memory_space<vmem>>, %arg7: memref<8x128xf32, #tpu.memory_space<vmem>>) attributes {dimension_semantics = [#tpu.dimension_semantics<arbitrary>], iteration_bounds = array<i64: 1>, scalar_prefetch = 0 : i64, scratch_operands = 1 : i64, tpu.core_type = #tpu.core_type<tc>, window_params = [{pipeline_mode = #tpu.pipeline_mode<synchronous>, transform_indices = @transform_0, window_bounds = array<i64: 8, 64>}, {pipeline_mode = #tpu.pipeline_mode<synchronous>, transform_indices = @transform_1, window_bounds = array<i64: 8, 64>}, {pipeline_mode = #tpu.pipeline_mode<synchronous>, transform_indices = @transform_2, window_bounds = array<i64: 8, 64>}, {pipeline_mode = #tpu.pipeline_mode<synchronous>, transform_indices = @transform_3, window_bounds = array<i64: 288, 64>}, {pipeline_mode = #tpu.pipeline_mode<synchronous>, transform_indices = @transform_4, window_bounds = array<i64: 128, 72>}, {pipeline_mode = #tpu.pipeline_mode<synchronous>, transform_indices = @transform_5, window_bounds = array<i64: 8, 256>}]} {
    %c0 = arith.constant 0 : index
    %c0_0 = arith.constant 0 : index
    %0 = vector.load %arg4[%c0, %c0_0] : memref<288x64xf32, #tpu.memory_space<vmem>>, vector<64x64xf32>
    %c64 = arith.constant 64 : index
    %c0_1 = arith.constant 0 : index
    %1 = vector.load %arg4[%c64, %c0_1] : memref<288x64xf32, #tpu.memory_space<vmem>>, vector<64x64xf32>
    %c128 = arith.constant 128 : index
    %c0_2 = arith.constant 0 : index
    %2 = vector.load %arg4[%c128, %c0_2] : memref<288x64xf32, #tpu.memory_space<vmem>>, vector<64x64xf32>
    %c192 = arith.constant 192 : index
    %c0_3 = arith.constant 0 : index
    %3 = vector.load %arg4[%c192, %c0_3] : memref<288x64xf32, #tpu.memory_space<vmem>>, vector<64x64xf32>
    %c256 = arith.constant 256 : index
    %c0_4 = arith.constant 0 : index
    %4 = vector.load %arg4[%c256, %c0_4] : memref<288x64xf32, #tpu.memory_space<vmem>>, vector<1x64xf32>
    %c264 = arith.constant 264 : index
    %c0_5 = arith.constant 0 : index
    %5 = vector.load %arg4[%c264, %c0_5] : memref<288x64xf32, #tpu.memory_space<vmem>>, vector<1x64xf32>
    %c272 = arith.constant 272 : index
    %c0_6 = arith.constant 0 : index
    %6 = vector.load %arg4[%c272, %c0_6] : memref<288x64xf32, #tpu.memory_space<vmem>>, vector<1x64xf32>
    %c280 = arith.constant 280 : index
    %c0_7 = arith.constant 0 : index
    %7 = vector.load %arg4[%c280, %c0_7] : memref<288x64xf32, #tpu.memory_space<vmem>>, vector<1x64xf32>
    %c0_8 = arith.constant 0 : index
    %c0_9 = arith.constant 0 : index
    %8 = vector.load %arg5[%c0_8, %c0_9] : memref<128x72xf32, #tpu.memory_space<vmem>>, vector<128x64xf32>
    %c0_10 = arith.constant 0 : index
    %c64_11 = arith.constant 64 : index
    %9 = vector.load %arg5[%c0_10, %c64_11] : memref<128x72xf32, #tpu.memory_space<vmem>>, vector<128x8xf32>
    %c0_12 = arith.constant 0 : index
    %c0_13 = arith.constant 0 : index
    %10 = vector.load %arg1[%c0_12, %c0_13] : memref<8x64xf32, #tpu.memory_space<vmem>>, vector<8x64xf32>
    %cst = arith.constant dense<0.000000e+00> : vector<8x64xf32>
    %11 = tpu.matmul %10, %0, %cst {dimension_numbers = #tpu.dot_dimension_numbers<[1], [0], [0], [1], [0, 0, 1, 1], [], []>} : vector<8x64xf32>, vector<64x64xf32>, vector<8x64xf32> -> vector<8x64xf32>
    %12 = vector.broadcast %4 : vector<1x64xf32> to vector<8x64xf32>
    %13 = arith.addf %11, %12 : vector<8x64xf32>
    %c0_14 = arith.constant 0 : index
    %c0_15 = arith.constant 0 : index
    %14 = vector.load %arg2[%c0_14, %c0_15] : memref<8x64xf32, #tpu.memory_space<vmem>>, vector<8x64xf32>
    %cst_16 = arith.constant dense<0.000000e+00> : vector<8x64xf32>
    %15 = tpu.matmul %14, %1, %cst_16 {dimension_numbers = #tpu.dot_dimension_numbers<[1], [0], [0], [1], [0, 0, 1, 1], [], []>} : vector<8x64xf32>, vector<64x64xf32>, vector<8x64xf32> -> vector<8x64xf32>
    %16 = vector.broadcast %5 : vector<1x64xf32> to vector<8x64xf32>
    %17 = arith.addf %15, %16 : vector<8x64xf32>
    %c0_17 = arith.constant 0 : index
    %c0_18 = arith.constant 0 : index
    %18 = vector.load %arg3[%c0_17, %c0_18] : memref<8x64xf32, #tpu.memory_space<vmem>>, vector<8x64xf32>
    %cst_19 = arith.constant dense<0.000000e+00> : vector<8x64xf32>
    %19 = tpu.matmul %18, %2, %cst_19 {dimension_numbers = #tpu.dot_dimension_numbers<[1], [0], [0], [1], [0, 0, 1, 1], [], []>} : vector<8x64xf32>, vector<64x64xf32>, vector<8x64xf32> -> vector<8x64xf32>
    %20 = vector.broadcast %6 : vector<1x64xf32> to vector<8x64xf32>
    %21 = arith.addf %19, %20 : vector<8x64xf32>
    %cst_20 = arith.constant dense<0.000000e+00> : vector<128x64xf32>
    %22 = tpu.matmul %9, %17, %cst_20 {dimension_numbers = #tpu.dot_dimension_numbers<[1], [0], [0], [1], [0, 0, 1, 1], [], []>} : vector<128x8xf32>, vector<8x64xf32>, vector<128x64xf32> -> vector<128x64xf32>
    %23 = arith.mulf %22, %8 : vector<128x64xf32>
    %cst_21 = arith.constant dense<0.000000e+00> : vector<128x64xf32>
    %24 = tpu.matmul %9, %21, %cst_21 {dimension_numbers = #tpu.dot_dimension_numbers<[1], [0], [0], [1], [0, 0, 1, 1], [], []>} : vector<128x8xf32>, vector<8x64xf32>, vector<128x64xf32> -> vector<128x64xf32>
    %25 = arith.mulf %24, %8 : vector<128x64xf32>
    %cst_22 = arith.constant dense<0.000000e+00> : vector<8x128xf32>
    %26 = tpu.matmul %13, %23, %cst_22 {dimension_numbers = #tpu.dot_dimension_numbers<[1], [1], [0], [0], [0, 0, 1, 0], [], []>} : vector<8x64xf32>, vector<128x64xf32>, vector<8x128xf32> -> vector<8x128xf32>
    %cst_23 = arith.constant 0.353553385 : f32
    %27 = vector.broadcast %cst_23 : f32 to vector<8x128xf32>
    %28 = arith.mulf %27, %26 : vector<8x128xf32>
    %cst_24 = arith.constant -2.000000e+00 : f32
    %29 = vector.broadcast %cst_24 : f32 to vector<8x128xf32>
    %30 = arith.addf %28, %29 : vector<8x128xf32>
    %31 = arith.negf %30 : vector<8x128xf32>
    %32 = math.exp %31 : vector<8x128xf32>
    %cst_25 = arith.constant 1.000000e+00 : f32
    %33 = vector.broadcast %cst_25 : f32 to vector<8x128xf32>
    %34 = arith.addf %33, %32 : vector<8x128xf32>
    %35 = arith.divf %33, %34 : vector<8x128xf32>
    %36 = tpu.iota {dimensions = array<i32: 1>} : vector<1x128xi32>
    %c7_i32 = arith.constant 7 : i32
    %37 = vector.broadcast %c7_i32 : i32 to vector<1x128xi32>
    %38 = arith.andi %36, %37 : vector<1x128xi32>
    %c1_i32 = arith.constant 1 : i32
    %39 = vector.broadcast %c1_i32 : i32 to vector<1x128xi32>
    %40 = arith.cmpi sge, %38, %39 : vector<1x128xi32>
    %41 = arith.extui %40 : vector<1x128xi1> to vector<1x128xi32>
    %42 = arith.sitofp %41 : vector<1x128xi32> to vector<1x128xf32>
    %c2_i32 = arith.constant 2 : i32
    %43 = vector.broadcast %c2_i32 : i32 to vector<1x128xi32>
    %44 = arith.cmpi sge, %38, %43 : vector<1x128xi32>
    %45 = arith.extui %44 : vector<1x128xi1> to vector<1x128xi32>
    %46 = arith.sitofp %45 : vector<1x128xi32> to vector<1x128xf32>
    %c4_i32 = arith.constant 4 : i32
    %47 = vector.broadcast %c4_i32 : i32 to vector<1x128xi32>
    %48 = arith.cmpi sge, %38, %47 : vector<1x128xi32>
    %49 = arith.extui %48 : vector<1x128xi1> to vector<1x128xi32>
    %50 = arith.sitofp %49 : vector<1x128xi32> to vector<1x128xf32>
    %cst_26 = arith.constant 1.000000e+00 : f32
    %51 = vector.broadcast %cst_26 : f32 to vector<8x128xf32>
    %52 = arith.subf %51, %35 : vector<8x128xf32>
    %cst_27 = arith.constant 9.99999997E-7 : f32
    %53 = vector.broadcast %cst_27 : f32 to vector<8x128xf32>
    %54 = arith.addf %52, %53 : vector<8x128xf32>
    %55 = math.log %54 : vector<8x128xf32>
    %c1_i32_28 = arith.constant 1 : i32
    %56 = tpu.dynamic_rotate %55 by %c1_i32_28 dim 1 : vector<8x128xf32>, i32 -> vector<8x128xf32>
    %57 = vector.broadcast %42 : vector<1x128xf32> to vector<8x128xf32>
    %58 = arith.mulf %56, %57 : vector<8x128xf32>
    %59 = arith.addf %55, %58 : vector<8x128xf32>
    %c2_i32_29 = arith.constant 2 : i32
    %60 = tpu.dynamic_rotate %59 by %c2_i32_29 dim 1 : vector<8x128xf32>, i32 -> vector<8x128xf32>
    %61 = vector.broadcast %46 : vector<1x128xf32> to vector<8x128xf32>
    %62 = arith.mulf %60, %61 : vector<8x128xf32>
    %63 = arith.addf %59, %62 : vector<8x128xf32>
    %c4_i32_30 = arith.constant 4 : i32
    %64 = tpu.dynamic_rotate %63 by %c4_i32_30 dim 1 : vector<8x128xf32>, i32 -> vector<8x128xf32>
    %65 = vector.broadcast %50 : vector<1x128xf32> to vector<8x128xf32>
    %66 = arith.mulf %64, %65 : vector<8x128xf32>
    %67 = arith.addf %63, %66 : vector<8x128xf32>
    %68 = arith.subf %67, %55 : vector<8x128xf32>
    %cst_31 = arith.constant 9.99999543E-7 : f32
    %69 = vector.broadcast %cst_31 : f32 to vector<8x128xf32>
    %70 = arith.addf %68, %69 : vector<8x128xf32>
    %71 = math.exp %70 : vector<8x128xf32>
    %cst_32 = arith.constant 9.99999997E-7 : f32
    %cst_33 = arith.constant 1.000000e+00 : f32
    %72 = vector.broadcast %cst_32 : f32 to vector<8x128xf32>
    %73 = arith.maximumf %72, %71 : vector<8x128xf32>
    %74 = vector.broadcast %cst_33 : f32 to vector<8x128xf32>
    %75 = arith.minimumf %74, %73 : vector<8x128xf32>
    %cst_34 = arith.constant 1.000000e+00 : f32
    %76 = vector.broadcast %cst_34 : f32 to vector<8x128xf32>
    %77 = arith.divf %76, %75 : vector<8x128xf32>
    %c0_i32 = arith.constant 0 : i32
    %78 = vector.broadcast %c0_i32 : i32 to vector<1x128xi32>
    %79 = arith.cmpi eq, %38, %78 : vector<1x128xi32>
    %80 = arith.extui %79 : vector<1x128xi1> to vector<1x128xi32>
    %81 = arith.sitofp %80 : vector<1x128xi32> to vector<1x128xf32>
    %82 = vector.extract_strided_slice %77 {offsets = [0, 0], sizes = [1, 128], strides = [1, 1]} : vector<8x128xf32> to vector<1x128xf32>
    %83 = arith.mulf %81, %82 : vector<1x128xf32>
    %c1_i32_35 = arith.constant 1 : i32
    %84 = tpu.dynamic_rotate %83 by %c1_i32_35 dim 1 : vector<1x128xf32>, i32 -> vector<1x128xf32>
    %85 = arith.mulf %84, %42 : vector<1x128xf32>
    %86 = arith.addf %83, %85 : vector<1x128xf32>
    %c2_i32_36 = arith.constant 2 : i32
    %87 = tpu.dynamic_rotate %86 by %c2_i32_36 dim 1 : vector<1x128xf32>, i32 -> vector<1x128xf32>
    %88 = arith.mulf %87, %46 : vector<1x128xf32>
    %89 = arith.addf %86, %88 : vector<1x128xf32>
    %c4_i32_37 = arith.constant 4 : i32
    %90 = tpu.dynamic_rotate %89 by %c4_i32_37 dim 1 : vector<1x128xf32>, i32 -> vector<1x128xf32>
    %91 = arith.mulf %90, %50 : vector<1x128xf32>
    %92 = arith.addf %89, %91 : vector<1x128xf32>
    %93 = vector.extract_strided_slice %35 {offsets = [0, 0], sizes = [1, 128], strides = [1, 1]} : vector<8x128xf32> to vector<1x128xf32>
    %94 = vector.extract_strided_slice %71 {offsets = [0, 0], sizes = [1, 128], strides = [1, 1]} : vector<8x128xf32> to vector<1x128xf32>
    %95 = arith.mulf %93, %94 : vector<1x128xf32>
    %96 = arith.mulf %95, %92 : vector<1x128xf32>
    %cst_38 = arith.constant 0.000000e+00 : f32
    %cst_39 = arith.constant 1.000000e+00 : f32
    %97 = vector.broadcast %cst_38 : f32 to vector<1x128xf32>
    %98 = arith.maximumf %97, %96 : vector<1x128xf32>
    %99 = vector.broadcast %cst_39 : f32 to vector<1x128xf32>
    %100 = arith.minimumf %99, %98 : vector<1x128xf32>
    %c0_40 = arith.constant 0 : index
    %c0_41 = arith.constant 0 : index
    %101 = vector.load %arg7[%c0_40, %c0_41] : memref<8x128xf32, #tpu.memory_space<vmem>>, vector<1x128xf32>
    tpu.vector_store %arg7[%c0_40, %c0_41], %100 {strides = array<i32>} : memref<8x128xf32, #tpu.memory_space<vmem>>, vector<1x128xf32>,
    %102 = vector.extract_strided_slice %77 {offsets = [1, 0], sizes = [1, 128], strides = [1, 1]} : vector<8x128xf32> to vector<1x128xf32>
    %103 = arith.mulf %100, %102 : vector<1x128xf32>
    %c1_i32_42 = arith.constant 1 : i32
    %104 = tpu.dynamic_rotate %103 by %c1_i32_42 dim 1 : vector<1x128xf32>, i32 -> vector<1x128xf32>
    %105 = arith.mulf %104, %42 : vector<1x128xf32>
    %106 = arith.addf %103, %105 : vector<1x128xf32>
    %c2_i32_43 = arith.constant 2 : i32
    %107 = tpu.dynamic_rotate %106 by %c2_i32_43 dim 1 : vector<1x128xf32>, i32 -> vector<1x128xf32>
    %108 = arith.mulf %107, %46 : vector<1x128xf32>
    %109 = arith.addf %106, %108 : vector<1x128xf32>
    %c4_i32_44 = arith.constant 4 : i32
    %110 = tpu.dynamic_rotate %109 by %c4_i32_44 dim 1 : vector<1x128xf32>, i32 -> vector<1x128xf32>
    %111 = arith.mulf %110, %50 : vector<1x128xf32>
    %112 = arith.addf %109, %111 : vector<1x128xf32>
    %113 = vector.extract_strided_slice %35 {offsets = [1, 0], sizes = [1, 128], strides = [1, 1]} : vector<8x128xf32> to vector<1x128xf32>
    %114 = vector.extract_strided_slice %71 {offsets = [1, 0], sizes = [1, 128], strides = [1, 1]} : vector<8x128xf32> to vector<1x128xf32>
    %115 = arith.mulf %113, %114 : vector<1x128xf32>
    %116 = arith.mulf %115, %112 : vector<1x128xf32>
    %cst_45 = arith.constant 0.000000e+00 : f32
    %cst_46 = arith.constant 1.000000e+00 : f32
    %117 = vector.broadcast %cst_45 : f32 to vector<1x128xf32>
    %118 = arith.maximumf %117, %116 : vector<1x128xf32>
    %119 = vector.broadcast %cst_46 : f32 to vector<1x128xf32>
    %120 = arith.minimumf %119, %118 : vector<1x128xf32>
    %c1 = arith.constant 1 : index
    %c0_47 = arith.constant 0 : index
    %121 = vector.load %arg7[%c1, %c0_47] : memref<8x128xf32, #tpu.memory_space<vmem>>, vector<1x128xf32>
    tpu.vector_store %arg7[%c1, %c0_47], %120 {strides = array<i32>} : memref<8x128xf32, #tpu.memory_space<vmem>>, vector<1x128xf32>,
    %122 = vector.extract_strided_slice %77 {offsets = [2, 0], sizes = [1, 128], strides = [1, 1]} : vector<8x128xf32> to vector<1x128xf32>
    %123 = arith.mulf %120, %122 : vector<1x128xf32>
    %c1_i32_48 = arith.constant 1 : i32
    %124 = tpu.dynamic_rotate %123 by %c1_i32_48 dim 1 : vector<1x128xf32>, i32 -> vector<1x128xf32>
    %125 = arith.mulf %124, %42 : vector<1x128xf32>
    %126 = arith.addf %123, %125 : vector<1x128xf32>
    %c2_i32_49 = arith.constant 2 : i32
    %127 = tpu.dynamic_rotate %126 by %c2_i32_49 dim 1 : vector<1x128xf32>, i32 -> vector<1x128xf32>
    %128 = arith.mulf %127, %46 : vector<1x128xf32>
    %129 = arith.addf %126, %128 : vector<1x128xf32>
    %c4_i32_50 = arith.constant 4 : i32
    %130 = tpu.dynamic_rotate %129 by %c4_i32_50 dim 1 : vector<1x128xf32>, i32 -> vector<1x128xf32>
    %131 = arith.mulf %130, %50 : vector<1x128xf32>
    %132 = arith.addf %129, %131 : vector<1x128xf32>
    %133 = vector.extract_strided_slice %35 {offsets = [2, 0], sizes = [1, 128], strides = [1, 1]} : vector<8x128xf32> to vector<1x128xf32>
    %134 = vector.extract_strided_slice %71 {offsets = [2, 0], sizes = [1, 128], strides = [1, 1]} : vector<8x128xf32> to vector<1x128xf32>
    %135 = arith.mulf %133, %134 : vector<1x128xf32>
    %136 = arith.mulf %135, %132 : vector<1x128xf32>
    %cst_51 = arith.constant 0.000000e+00 : f32
    %cst_52 = arith.constant 1.000000e+00 : f32
    %137 = vector.broadcast %cst_51 : f32 to vector<1x128xf32>
    %138 = arith.maximumf %137, %136 : vector<1x128xf32>
    %139 = vector.broadcast %cst_52 : f32 to vector<1x128xf32>
    %140 = arith.minimumf %139, %138 : vector<1x128xf32>
    %c2 = arith.constant 2 : index
    %c0_53 = arith.constant 0 : index
    %141 = vector.load %arg7[%c2, %c0_53] : memref<8x128xf32, #tpu.memory_space<vmem>>, vector<1x128xf32>
    tpu.vector_store %arg7[%c2, %c0_53], %140 {strides = array<i32>} : memref<8x128xf32, #tpu.memory_space<vmem>>, vector<1x128xf32>,
    %142 = vector.extract_strided_slice %77 {offsets = [3, 0], sizes = [1, 128], strides = [1, 1]} : vector<8x128xf32> to vector<1x128xf32>
    %143 = arith.mulf %140, %142 : vector<1x128xf32>
    %c1_i32_54 = arith.constant 1 : i32
    %144 = tpu.dynamic_rotate %143 by %c1_i32_54 dim 1 : vector<1x128xf32>, i32 -> vector<1x128xf32>
    %145 = arith.mulf %144, %42 : vector<1x128xf32>
    %146 = arith.addf %143, %145 : vector<1x128xf32>
    %c2_i32_55 = arith.constant 2 : i32
    %147 = tpu.dynamic_rotate %146 by %c2_i32_55 dim 1 : vector<1x128xf32>, i32 -> vector<1x128xf32>
    %148 = arith.mulf %147, %46 : vector<1x128xf32>
    %149 = arith.addf %146, %148 : vector<1x128xf32>
    %c4_i32_56 = arith.constant 4 : i32
    %150 = tpu.dynamic_rotate %149 by %c4_i32_56 dim 1 : vector<1x128xf32>, i32 -> vector<1x128xf32>
    %151 = arith.mulf %150, %50 : vector<1x128xf32>
    %152 = arith.addf %149, %151 : vector<1x128xf32>
    %153 = vector.extract_strided_slice %35 {offsets = [3, 0], sizes = [1, 128], strides = [1, 1]} : vector<8x128xf32> to vector<1x128xf32>
    %154 = vector.extract_strided_slice %71 {offsets = [3, 0], sizes = [1, 128], strides = [1, 1]} : vector<8x128xf32> to vector<1x128xf32>
    %155 = arith.mulf %153, %154 : vector<1x128xf32>
    %156 = arith.mulf %155, %152 : vector<1x128xf32>
    %cst_57 = arith.constant 0.000000e+00 : f32
    %cst_58 = arith.constant 1.000000e+00 : f32
    %157 = vector.broadcast %cst_57 : f32 to vector<1x128xf32>
    %158 = arith.maximumf %157, %156 : vector<1x128xf32>
    %159 = vector.broadcast %cst_58 : f32 to vector<1x128xf32>
    %160 = arith.minimumf %159, %158 : vector<1x128xf32>
    %c3 = arith.constant 3 : index
    %c0_59 = arith.constant 0 : index
    %161 = vector.load %arg7[%c3, %c0_59] : memref<8x128xf32, #tpu.memory_space<vmem>>, vector<1x128xf32>
    tpu.vector_store %arg7[%c3, %c0_59], %160 {strides = array<i32>} : memref<8x128xf32, #tpu.memory_space<vmem>>, vector<1x128xf32>,
    %162 = vector.extract_strided_slice %77 {offsets = [4, 0], sizes = [1, 128], strides = [1, 1]} : vector<8x128xf32> to vector<1x128xf32>
    %163 = arith.mulf %160, %162 : vector<1x128xf32>
    %c1_i32_60 = arith.constant 1 : i32
    %164 = tpu.dynamic_rotate %163 by %c1_i32_60 dim 1 : vector<1x128xf32>, i32 -> vector<1x128xf32>
    %165 = arith.mulf %164, %42 : vector<1x128xf32>
    %166 = arith.addf %163, %165 : vector<1x128xf32>
    %c2_i32_61 = arith.constant 2 : i32
    %167 = tpu.dynamic_rotate %166 by %c2_i32_61 dim 1 : vector<1x128xf32>, i32 -> vector<1x128xf32>
    %168 = arith.mulf %167, %46 : vector<1x128xf32>
    %169 = arith.addf %166, %168 : vector<1x128xf32>
    %c4_i32_62 = arith.constant 4 : i32
    %170 = tpu.dynamic_rotate %169 by %c4_i32_62 dim 1 : vector<1x128xf32>, i32 -> vector<1x128xf32>
    %171 = arith.mulf %170, %50 : vector<1x128xf32>
    %172 = arith.addf %169, %171 : vector<1x128xf32>
    %173 = vector.extract_strided_slice %35 {offsets = [4, 0], sizes = [1, 128], strides = [1, 1]} : vector<8x128xf32> to vector<1x128xf32>
    %174 = vector.extract_strided_slice %71 {offsets = [4, 0], sizes = [1, 128], strides = [1, 1]} : vector<8x128xf32> to vector<1x128xf32>
    %175 = arith.mulf %173, %174 : vector<1x128xf32>
    %176 = arith.mulf %175, %172 : vector<1x128xf32>
    %cst_63 = arith.constant 0.000000e+00 : f32
    %cst_64 = arith.constant 1.000000e+00 : f32
    %177 = vector.broadcast %cst_63 : f32 to vector<1x128xf32>
    %178 = arith.maximumf %177, %176 : vector<1x128xf32>
    %179 = vector.broadcast %cst_64 : f32 to vector<1x128xf32>
    %180 = arith.minimumf %179, %178 : vector<1x128xf32>
    %c4 = arith.constant 4 : index
    %c0_65 = arith.constant 0 : index
    %181 = vector.load %arg7[%c4, %c0_65] : memref<8x128xf32, #tpu.memory_space<vmem>>, vector<1x128xf32>
    tpu.vector_store %arg7[%c4, %c0_65], %180 {strides = array<i32>} : memref<8x128xf32, #tpu.memory_space<vmem>>, vector<1x128xf32>,
    %182 = vector.extract_strided_slice %77 {offsets = [5, 0], sizes = [1, 128], strides = [1, 1]} : vector<8x128xf32> to vector<1x128xf32>
    %183 = arith.mulf %180, %182 : vector<1x128xf32>
    %c1_i32_66 = arith.constant 1 : i32
    %184 = tpu.dynamic_rotate %183 by %c1_i32_66 dim 1 : vector<1x128xf32>, i32 -> vector<1x128xf32>
    %185 = arith.mulf %184, %42 : vector<1x128xf32>
    %186 = arith.addf %183, %185 : vector<1x128xf32>
    %c2_i32_67 = arith.constant 2 : i32
    %187 = tpu.dynamic_rotate %186 by %c2_i32_67 dim 1 : vector<1x128xf32>, i32 -> vector<1x128xf32>
    %188 = arith.mulf %187, %46 : vector<1x128xf32>
    %189 = arith.addf %186, %188 : vector<1x128xf32>
    %c4_i32_68 = arith.constant 4 : i32
    %190 = tpu.dynamic_rotate %189 by %c4_i32_68 dim 1 : vector<1x128xf32>, i32 -> vector<1x128xf32>
    %191 = arith.mulf %190, %50 : vector<1x128xf32>
    %192 = arith.addf %189, %191 : vector<1x128xf32>
    %193 = vector.extract_strided_slice %35 {offsets = [5, 0], sizes = [1, 128], strides = [1, 1]} : vector<8x128xf32> to vector<1x128xf32>
    %194 = vector.extract_strided_slice %71 {offsets = [5, 0], sizes = [1, 128], strides = [1, 1]} : vector<8x128xf32> to vector<1x128xf32>
    %195 = arith.mulf %193, %194 : vector<1x128xf32>
    %196 = arith.mulf %195, %192 : vector<1x128xf32>
    %cst_69 = arith.constant 0.000000e+00 : f32
    %cst_70 = arith.constant 1.000000e+00 : f32
    %197 = vector.broadcast %cst_69 : f32 to vector<1x128xf32>
    %198 = arith.maximumf %197, %196 : vector<1x128xf32>
    %199 = vector.broadcast %cst_70 : f32 to vector<1x128xf32>
    %200 = arith.minimumf %199, %198 : vector<1x128xf32>
    %c5 = arith.constant 5 : index
    %c0_71 = arith.constant 0 : index
    %201 = vector.load %arg7[%c5, %c0_71] : memref<8x128xf32, #tpu.memory_space<vmem>>, vector<1x128xf32>
    tpu.vector_store %arg7[%c5, %c0_71], %200 {strides = array<i32>} : memref<8x128xf32, #tpu.memory_space<vmem>>, vector<1x128xf32>,
    %202 = vector.extract_strided_slice %77 {offsets = [6, 0], sizes = [1, 128], strides = [1, 1]} : vector<8x128xf32> to vector<1x128xf32>
    %203 = arith.mulf %200, %202 : vector<1x128xf32>
    %c1_i32_72 = arith.constant 1 : i32
    %204 = tpu.dynamic_rotate %203 by %c1_i32_72 dim 1 : vector<1x128xf32>, i32 -> vector<1x128xf32>
    %205 = arith.mulf %204, %42 : vector<1x128xf32>
    %206 = arith.addf %203, %205 : vector<1x128xf32>
    %c2_i32_73 = arith.constant 2 : i32
    %207 = tpu.dynamic_rotate %206 by %c2_i32_73 dim 1 : vector<1x128xf32>, i32 -> vector<1x128xf32>
    %208 = arith.mulf %207, %46 : vector<1x128xf32>
    %209 = arith.addf %206, %208 : vector<1x128xf32>
    %c4_i32_74 = arith.constant 4 : i32
    %210 = tpu.dynamic_rotate %209 by %c4_i32_74 dim 1 : vector<1x128xf32>, i32 -> vector<1x128xf32>
    %211 = arith.mulf %210, %50 : vector<1x128xf32>
    %212 = arith.addf %209, %211 : vector<1x128xf32>
    %213 = vector.extract_strided_slice %35 {offsets = [6, 0], sizes = [1, 128], strides = [1, 1]} : vector<8x128xf32> to vector<1x128xf32>
    %214 = vector.extract_strided_slice %71 {offsets = [6, 0], sizes = [1, 128], strides = [1, 1]} : vector<8x128xf32> to vector<1x128xf32>
    %215 = arith.mulf %213, %214 : vector<1x128xf32>
    %216 = arith.mulf %215, %212 : vector<1x128xf32>
    %cst_75 = arith.constant 0.000000e+00 : f32
    %cst_76 = arith.constant 1.000000e+00 : f32
    %217 = vector.broadcast %cst_75 : f32 to vector<1x128xf32>
    %218 = arith.maximumf %217, %216 : vector<1x128xf32>
    %219 = vector.broadcast %cst_76 : f32 to vector<1x128xf32>
    %220 = arith.minimumf %219, %218 : vector<1x128xf32>
    %c6 = arith.constant 6 : index
    %c0_77 = arith.constant 0 : index
    %221 = vector.load %arg7[%c6, %c0_77] : memref<8x128xf32, #tpu.memory_space<vmem>>, vector<1x128xf32>
    tpu.vector_store %arg7[%c6, %c0_77], %220 {strides = array<i32>} : memref<8x128xf32, #tpu.memory_space<vmem>>, vector<1x128xf32>,
    %222 = vector.extract_strided_slice %77 {offsets = [7, 0], sizes = [1, 128], strides = [1, 1]} : vector<8x128xf32> to vector<1x128xf32>
    %223 = arith.mulf %220, %222 : vector<1x128xf32>
    %c1_i32_78 = arith.constant 1 : i32
    %224 = tpu.dynamic_rotate %223 by %c1_i32_78 dim 1 : vector<1x128xf32>, i32 -> vector<1x128xf32>
    %225 = arith.mulf %224, %42 : vector<1x128xf32>
    %226 = arith.addf %223, %225 : vector<1x128xf32>
    %c2_i32_79 = arith.constant 2 : i32
    %227 = tpu.dynamic_rotate %226 by %c2_i32_79 dim 1 : vector<1x128xf32>, i32 -> vector<1x128xf32>
    %228 = arith.mulf %227, %46 : vector<1x128xf32>
    %229 = arith.addf %226, %228 : vector<1x128xf32>
    %c4_i32_80 = arith.constant 4 : i32
    %230 = tpu.dynamic_rotate %229 by %c4_i32_80 dim 1 : vector<1x128xf32>, i32 -> vector<1x128xf32>
    %231 = arith.mulf %230, %50 : vector<1x128xf32>
    %232 = arith.addf %229, %231 : vector<1x128xf32>
    %233 = vector.extract_strided_slice %35 {offsets = [7, 0], sizes = [1, 128], strides = [1, 1]} : vector<8x128xf32> to vector<1x128xf32>
    %234 = vector.extract_strided_slice %71 {offsets = [7, 0], sizes = [1, 128], strides = [1, 1]} : vector<8x128xf32> to vector<1x128xf32>
    %235 = arith.mulf %233, %234 : vector<1x128xf32>
    %236 = arith.mulf %235, %232 : vector<1x128xf32>
    %cst_81 = arith.constant 0.000000e+00 : f32
    %cst_82 = arith.constant 1.000000e+00 : f32
    %237 = vector.broadcast %cst_81 : f32 to vector<1x128xf32>
    %238 = arith.maximumf %237, %236 : vector<1x128xf32>
    %239 = vector.broadcast %cst_82 : f32 to vector<1x128xf32>
    %240 = arith.minimumf %239, %238 : vector<1x128xf32>
    %c7 = arith.constant 7 : index
    %c0_83 = arith.constant 0 : index
    %241 = vector.load %arg7[%c7, %c0_83] : memref<8x128xf32, #tpu.memory_space<vmem>>, vector<1x128xf32>
    tpu.vector_store %arg7[%c7, %c0_83], %240 {strides = array<i32>} : memref<8x128xf32, #tpu.memory_space<vmem>>, vector<1x128xf32>,
    %c0_84 = arith.constant 0 : index
    %c0_85 = arith.constant 0 : index
    %242 = vector.load %arg7[%c0_84, %c0_85] : memref<8x128xf32, #tpu.memory_space<vmem>>, vector<8x128xf32>
    %c1_i32_86 = arith.constant 1 : i32
    %243 = tpu.dynamic_rotate %242 by %c1_i32_86 dim 1 : vector<8x128xf32>, i32 -> vector<8x128xf32>
    %244 = vector.broadcast %42 : vector<1x128xf32> to vector<8x128xf32>
    %245 = arith.mulf %243, %244 : vector<8x128xf32>
    %246 = arith.addf %242, %245 : vector<8x128xf32>
    %c2_i32_87 = arith.constant 2 : i32
    %247 = tpu.dynamic_rotate %246 by %c2_i32_87 dim 1 : vector<8x128xf32>, i32 -> vector<8x128xf32>
    %248 = vector.broadcast %46 : vector<1x128xf32> to vector<8x128xf32>
    %249 = arith.mulf %247, %248 : vector<8x128xf32>
    %250 = arith.addf %246, %249 : vector<8x128xf32>
    %c4_i32_88 = arith.constant 4 : i32
    %251 = tpu.dynamic_rotate %250 by %c4_i32_88 dim 1 : vector<8x128xf32>, i32 -> vector<8x128xf32>
    %252 = vector.broadcast %50 : vector<1x128xf32> to vector<8x128xf32>
    %253 = arith.mulf %251, %252 : vector<8x128xf32>
    %254 = arith.addf %250, %253 : vector<8x128xf32>
    %c1_i32_89 = arith.constant 1 : i32
    %255 = tpu.dynamic_rotate %254 by %c1_i32_89 dim 1 : vector<8x128xf32>, i32 -> vector<8x128xf32>
    %cst_90 = arith.constant 0.000000e+00 : f32
    %cst_91 = arith.constant 1.000000e+00 : f32
    %256 = vector.broadcast %cst_90 : f32 to vector<8x128xf32>
    %257 = arith.maximumf %256, %255 : vector<8x128xf32>
    %258 = vector.broadcast %cst_91 : f32 to vector<8x128xf32>
    %259 = arith.minimumf %258, %257 : vector<8x128xf32>
    %cst_92 = arith.constant 1.000000e+00 : f32
    %260 = vector.broadcast %cst_92 : f32 to vector<8x128xf32>
    %261 = arith.subf %260, %259 : vector<8x128xf32>
    %262 = tpu.iota {dimensions = array<i32: 1>} : vector<8x128xi32>
    %c7_i32_93 = arith.constant 7 : i32
    %263 = vector.broadcast %c7_i32_93 : i32 to vector<8x128xi32>
    %264 = arith.andi %262, %263 : vector<8x128xi32>
    %c7_i32_94 = arith.constant 7 : i32
    %265 = vector.broadcast %c7_i32_94 : i32 to vector<8x128xi32>
    %266 = arith.cmpi eq, %264, %265 : vector<8x128xi32>
    %267 = arith.select %266, %261, %242 : vector<8x128xi1>, vector<8x128xf32>
    %cst_95 = arith.constant dense<0.000000e+00> : vector<8x64xf32>
    %268 = tpu.matmul %267, %25, %cst_95 {dimension_numbers = #tpu.dot_dimension_numbers<[1], [0], [0], [1], [0, 0, 1, 1], [], []>} : vector<8x128xf32>, vector<128x64xf32>, vector<8x64xf32> -> vector<8x64xf32>
    %cst_96 = arith.constant dense<0.000000e+00> : vector<8x64xf32>
    %269 = tpu.matmul %268, %3, %cst_96 {dimension_numbers = #tpu.dot_dimension_numbers<[1], [0], [0], [1], [0, 0, 1, 1], [], []>} : vector<8x64xf32>, vector<64x64xf32>, vector<8x64xf32> -> vector<8x64xf32>
    %270 = vector.broadcast %7 : vector<1x64xf32> to vector<8x64xf32>
    %271 = arith.addf %269, %270 : vector<8x64xf32>
    %c0_97 = arith.constant 0 : index
    %c0_98 = arith.constant 0 : index
    %272 = vector.load %arg6[%c0_97, %c0_98] : memref<8x256xf32, #tpu.memory_space<vmem>>, vector<8x64xf32>
    tpu.vector_store %arg6[%c0_97, %c0_98], %271 {strides = array<i32>} : memref<8x256xf32, #tpu.memory_space<vmem>>, vector<8x64xf32>,
    %273 = vector.extract_strided_slice %267 {offsets = [0, 0], sizes = [8, 64], strides = [1, 1]} : vector<8x128xf32> to vector<8x64xf32>
    %c0_99 = arith.constant 0 : index
    %c64_100 = arith.constant 64 : index
    %274 = vector.load %arg6[%c0_99, %c64_100] : memref<8x256xf32, #tpu.memory_space<vmem>>, vector<8x64xf32>
    tpu.vector_store %arg6[%c0_99, %c64_100], %273 {strides = array<i32>} : memref<8x256xf32, #tpu.memory_space<vmem>>, vector<8x64xf32>,
    %275 = vector.extract_strided_slice %35 {offsets = [0, 0], sizes = [8, 64], strides = [1, 1]} : vector<8x128xf32> to vector<8x64xf32>
    %c0_101 = arith.constant 0 : index
    %c128_102 = arith.constant 128 : index
    %276 = vector.load %arg6[%c0_101, %c128_102] : memref<8x256xf32, #tpu.memory_space<vmem>>, vector<8x64xf32>
    tpu.vector_store %arg6[%c0_101, %c128_102], %275 {strides = array<i32>} : memref<8x256xf32, #tpu.memory_space<vmem>>, vector<8x64xf32>,
    %cst_103 = arith.constant 0.000000e+00 : f32
    %277 = vector.broadcast %cst_103 : f32 to vector<8x64xf32>
    %c0_104 = arith.constant 0 : index
    %c192_105 = arith.constant 192 : index
    %278 = vector.load %arg6[%c0_104, %c192_105] : memref<8x256xf32, #tpu.memory_space<vmem>>, vector<8x64xf32>
    tpu.vector_store %arg6[%c0_104, %c192_105], %277 {strides = array<i32>} : memref<8x256xf32, #tpu.memory_space<vmem>>, vector<8x64xf32>,
    return
  }
  func.func @transform_0(%arg0: i32) -> (i32, i32) {
    %c0_i32 = arith.constant 0 : i32
    %c0_i32_0 = arith.constant 0 : i32
    %c0_i32_1 = arith.constant 0 : i32
    return %c0_i32, %c0_i32_0 : i32, i32
  }
  func.func @transform_1(%arg0: i32) -> (i32, i32) {
    %c0_i32 = arith.constant 0 : i32
    %c0_i32_0 = arith.constant 0 : i32
    %c0_i32_1 = arith.constant 0 : i32
    return %c0_i32, %c0_i32_0 : i32, i32
  }
  func.func @transform_2(%arg0: i32) -> (i32, i32) {
    %c0_i32 = arith.constant 0 : i32
    %c0_i32_0 = arith.constant 0 : i32
    %c0_i32_1 = arith.constant 0 : i32
    return %c0_i32, %c0_i32_0 : i32, i32
  }
  func.func @transform_3(%arg0: i32) -> (i32, i32) {
    %c0_i32 = arith.constant 0 : i32
    %c0_i32_0 = arith.constant 0 : i32
    %c0_i32_1 = arith.constant 0 : i32
    return %c0_i32, %c0_i32_0 : i32, i32
  }
  func.func @transform_4(%arg0: i32) -> (i32, i32) {
    %c0_i32 = arith.constant 0 : i32
    %c0_i32_0 = arith.constant 0 : i32
    %c0_i32_1 = arith.constant 0 : i32
    return %c0_i32, %c0_i32_0 : i32, i32
  }
  func.func @transform_5(%arg0: i32) -> (i32, i32) {
    %c0_i32 = arith.constant 0 : i32
    %c0_i32_0 = arith.constant 0 : i32
    %c0_i32_1 = arith.constant 0 : i32
    return %c0_i32, %c0_i32_0 : i32, i32
  }
}

</mosaic_0001>

<bundles_post_ra>
// kernel: monotonic_attention_forward.1
= control target key start
LH: loop header
LB: loop body
LE: loop exit
PB: predicated region body
PF: predicated region fallthrough
CT: control target
= control target key end

     0   :  { %v1812_v0 = vmov 0.0|0.0   ;;  %vm1813_vm0 = vmmov 0   ;;  %v1814_v8 = vmov 0.0   ;;  %s1815_s29 = smov 64   ;;  %vm77_vm1 = vcmask 523264   ;;  %s1816_s9 = smov 1   ;;  %s2332_s3 = inlined_call_operand.vmem [shape: f32[288,64], index: 3, kind: input, shape index: {}]   ;;  %s2333_s4 = inlined_call_operand.vmem [shape: f32[128,72], index: 4, kind: input, shape index: {}]   ;;  %s2334_s0 = inlined_call_operand.vmem [shape: f32[8,64], index: 0, kind: input, shape index: {}]   ;;  %s2335_s1 = inlined_call_operand.vmem [shape: f32[8,64], index: 1, kind: input, shape index: {}]   ;;  %s2336_s2 = inlined_call_operand.vmem [shape: f32[8,64], index: 2, kind: input, shape index: {}]   ;;  %s2337_s5 = inlined_call_operand.vmem [shape: f32[8,256], index: 5, kind: output, shape index: {}]  }
   0x1   :  { %1691 = vmatprep.subr.bf16.mxu0 %v1812_v0  ;;  %1703 = vmatprep.subr.bf16.mxu1 %v1812_v0  ;;  %v20_v1 = vld [vmem:[%s2332_s3] sm:$0xff]  ;;  %v21_v2 = vld [vmem:[%s2332_s3 + $0x8] sm:$0xff]  ;;  %v22_v6 = vld [vmem:[%s2332_s3 + $0x10] sm:$0xff]  ;;  %vm355_vm2 = vcmask 64512   ;;  %s1817_s10 = smov 2   ;;  %s1818_s11 = smov 4  }
   0x2   :  { %v28_v3 = vld [vmem:[%s2332_s3 + $0x40] sm:$0xff]  ;;  %v1692_v4 = vpack.c.bf16 %v21_v2, %v20_v1  ;;  %v29_v5 = vld [vmem:[%s2332_s3 + $0x48] sm:$0xff]  ;;  %v23_v7 = vld [vmem:[%s2332_s3 + $0x18] sm:$0xff]  ;;  %1528 = vmatprep.mubr.msk.f32.mxu1 %vm1813_vm0, %v1814_v8  ;;  %1509 = vmatprep.mubr.msk.f32.mxu0 %vm1813_vm0, %v1814_v8  ;;  %vm1319_vm9 = vcmask 1048064  }
   0x3   :  { %v1704_v9 = vpack.c.bf16 %v29_v5, %v28_v3  ;;  %v30_v10 = vld [vmem:[%s2332_s3 + $0x50] sm:$0xff]  ;;  %v31_v11 = vld [vmem:[%s2332_s3 + $0x58] sm:$0xff]  ;;  %v1695_v12 = vpack.c.bf16 %v23_v7, %v22_v6  ;;  %v24_v14 = vld [vmem:[%s2332_s3 + $0x20] sm:$0xff] }
   0x4   :  { %1693 = vmatpush3.bf16.msra.mxu0 %v1692_v4  ;;  %v1707_v13 = vpack.c.bf16 %v31_v11, %v30_v10  ;;  %v25_v15 = vld [vmem:[%s2332_s3 + $0x28] sm:$0xff]  ;;  %v32_v16 = vld [vmem:[%s2332_s3 + $0x60] sm:$0xff]  ;;  %v26_v20 = vld [vmem:[%s2332_s3 + $0x30] sm:$0xff] }
   0x5   :  { %1705 = vmatpush3.bf16.msra.mxu1 %v1704_v9  ;;  %1694 = vmatprep.subr.bf16.mxu0 %v1812_v0  ;;  %v33_v17 = vld [vmem:[%s2332_s3 + $0x68] sm:$0xff]  ;;  %v1698_v18 = vpack.c.bf16 %v25_v15, %v24_v14  ;;  %v27_v21 = vld [vmem:[%s2332_s3 + $0x38] sm:$0xff]  ;;  %v34_v22 = vld [vmem:[%s2332_s3 + $0x70] sm:$0xff] }
   0x6   :  { %1706 = vmatprep.subr.bf16.mxu1 %v1812_v0  ;;  %v1710_v19 = vpack.c.bf16 %v33_v17, %v32_v16  ;;  %v35_v23 = vld [vmem:[%s2332_s3 + $0x78] sm:$0xff]  ;;  %v1910_v24 = vld [vmem:[%s2333_s4] sm:$0xff]  ;;  %v1915_v25 = vld [vmem:[%s2333_s4 + $0x10] sm:$0xff]  ;;  %v1701_v26 = vpack.c.bf16 %v27_v21, %v26_v20 }
   0x7   :  { %323 = vrot.lane.b32.xlu0 %v1910_v24, %s1815_s29  ;;  %327 = vrot.lane.b32.xlu1 %v1915_v25, %s1815_s29  ;;  %v1924_v27 = vld [vmem:[%s2333_s4 + $0x8] sm:$0xff]  ;;  %v1929_v28 = vld [vmem:[%s2333_s4 + $0x18] sm:$0xff]  ;;  %v1713_v29 = vpack.c.bf16 %v35_v23, %v34_v22  ;;  %vm2113_vm3 = vmpackc.low %vm77_vm1, %vm77_vm1 }
   0x8   :  { %1696 = vmatpush3.bf16.msra.mxu0 %v1695_v12  ;;  %v36_v30 = vld [vmem:[%s2332_s3 + $0x80] sm:$0xff]  ;;  %v37_v31 = vld [vmem:[%s2332_s3 + $0x88] sm:$0xff]  ;;  %v38_v36 = vld [vmem:[%s2332_s3 + $0x90] sm:$0xff] }
   0x9   :  { %1708 = vmatpush3.bf16.msra.mxu1 %v1707_v13  ;;  %1697 = vmatprep.subr.bf16.mxu0 %v1812_v0  ;;  %v72_v32 = vld [vmem:[%s2334_s0] sm:$0xff]  ;;  %v1716_v33 = vpack.c.bf16 %v37_v31, %v36_v30  ;;  %v39_v37 = vld [vmem:[%s2332_s3 + $0x98] sm:$0xff]  ;;  %v1967_v38 = vld [vmem:[%s2333_s4 + $0x28] sm:$0xff] }
   0xa   :  { %1709 = vmatprep.subr.bf16.mxu1 %v1812_v0  ;;  %v1949_v34 = vld [vmem:[%s2333_s4 + $0x20] sm:$0xff]  ;;  %v1719_v39 = vpack.c.bf16 %v39_v37, %v38_v36  ;;  %v1973_v40 = vld [vmem:[%s2333_s4 + $0x30] sm:$0xff]  ;;  %v41_v42 = vld [vmem:[%s2332_s3 + $0xa8] sm:$0xff] }
   0xb   :  { %325 = vrot.lane.b32.xlu0 %v1924_v27, %s1815_s29  ;;  %329 = vrot.lane.b32.xlu1 %v1929_v28, %s1815_s29  ;;  %v151_v35 = vld [vmem:[%s2335_s1] sm:$0xff]  ;;  %v1991_v43 = vld [vmem:[%s2333_s4 + $0x38] sm:$0xff] }
   0xc   :  { %1699 = vmatpush3.bf16.msra.mxu0 %v1698_v18  ;;  %v40_v41 = vld [vmem:[%s2332_s3 + $0xa0] sm:$0xff]  ;;  %v42_v46 = vld [vmem:[%s2332_s3 + $0xb0] sm:$0xff]  ;;  %v43_v47 = vld [vmem:[%s2332_s3 + $0xb8] sm:$0xff] }
   0xd   :  { %1711 = vmatpush3.bf16.msra.mxu1 %v1710_v19  ;;  %1700 = vmatprep.subr.bf16.mxu0 %v1812_v0  ;;  %v1722_v44 = vpack.c.bf16 %v41_v42, %v40_v41  ;;  %v1996_v45 = vld [vmem:[%s2333_s4 + $0x40] sm:$0xff]  ;;  %v2012_v48 = vld [vmem:[%s2333_s4 + $0x48] sm:$0xff]  ;;  %v1725_v49 = vpack.c.bf16 %v43_v47, %v42_v46  ;;  %v2017_v50 = vld [vmem:[%s2333_s4 + $0x50] sm:$0xff] }
   0xe   :  { %1712 = vmatprep.subr.bf16.mxu1 %v1812_v0  ;;  %v2027_v51 = vld [vmem:[%s2333_s4 + $0x58] sm:$0xff]  ;;  %v229_v52 = vld [vmem:[%s2336_s2] sm:$0xff]  ;;  %v2045_v54 = vld [vmem:[%s2333_s4 + $0x68] sm:$0xff] }
   0xf   :  { %331 = vrot.lane.b32.xlu0 %v1949_v34, %s1815_s29  ;;  %333 = vrot.lane.b32.xlu1 %v1967_v38, %s1815_s29  ;;  %v2035_v53 = vld [vmem:[%s2333_s4 + $0x60] sm:$0xff]  ;;  %v2050_v55 = vld [vmem:[%s2333_s4 + $0x70] sm:$0xff] }
  0x10   :  { %1702 = vmatpush3.bf16.msra.mxu0 %v1701_v26  ;;  %v2059_v56 = vld [vmem:[%s2333_s4 + $0x78] sm:$0xff]  ;;  %v1329_v58 = vld [vmem:[%s2332_s3 + $0x108] ss:$0 sm:$0xff]  ;;  %v1331_v7 = vld [vmem:[%s2332_s3 + $0x110] ss:$0 sm:$0xff] }
  0x11   :  { %1714 = vmatpush3.bf16.msra.mxu1 %v1713_v29  ;;  %1715 = vmatprep.subr.bf16.mxu0 %v1812_v0 }
  0x13   :  { %1510 = vmatmul.mubr.msk.f32.vlgmr.msra.gmra.mrb[0].mxu0 %vm77_vm1, %v72_v32  ;;  %335 = vrot.lane.b32.xlu0 %v1973_v40, %s1815_s29 }
  0x14   :  { %1529 = vmatmul.mubr.msk.f32.vlgmr.msra.gmra.mrb[0].mxu1 %vm77_vm1, %v151_v35  ;;  %1717 = vmatpush3.bf16.msra.mxu0 %v1716_v33 }
  0x15   :  { %1718 = vmatprep.subr.bf16.mxu0 %v1812_v0  ;;  %1547 = vmatprep.mubr.msk.f32.mxu0 %vm1813_vm0, %v1814_v8 }
  0x16   :  { %337 = vrot.lane.b32.xlu1 %v1991_v43, %s1815_s29 }
  0x17   :  { %339 = vrot.lane.b32.xlu0 %v1996_v45, %s1815_s29 }
  0x18   :  { %1720 = vmatpush3.bf16.msra.mxu0 %v1719_v39 }
  0x19   :  { %1721 = vmatprep.subr.bf16.mxu0 %v1812_v0 }
  0x1a   :  { %341 = vrot.lane.b32.xlu1 %v2012_v48, %s1815_s29 }
  0x1b   :  { %343 = vrot.lane.b32.xlu0 %v2017_v50, %s1815_s29 }
  0x1c   :  { %1723 = vmatpush3.bf16.msra.mxu0 %v1722_v44 }
  0x1d   :  { %1724 = vmatprep.subr.bf16.mxu0 %v1812_v0 }
  0x1e   :  { %345 = vrot.lane.b32.xlu1 %v2027_v51, %s1815_s29 }
  0x1f   :  { %347 = vrot.lane.b32.xlu0 %v2035_v53, %s1815_s29 }
  0x20   :  { %1726 = vmatpush3.bf16.msra.mxu0 %v1725_v49 }
  0x22   :  { %349 = vrot.lane.b32.xlu1 %v2045_v54, %s1815_s29 }
  0x23   :  { %1548 = vmatmul.mubr.msk.f32.vlgmr.msra.gmra.mrb[2].mxu0 %vm77_vm1, %v229_v52  ;;  %351 = vrot.lane.b32.xlu0 %v2050_v55, %s1815_s29 }
  0x26   :  { %353 = vrot.lane.b32.xlu1 %v2059_v56, %s1815_s29 }
  0x79   :  { %v324_v57 = vpop.permute.xlu0 %323  ;;  %v328_v59 = vpop.permute.xlu1 %327 }
  0x7a   :  { %1552 = vmatprep.mubr.msk.f32.mxu1 %vm355_vm2, %v324_v57  ;;  %1578 = vmatprep.mubr.msk.f32.mxu0 %vm355_vm2, %v324_v57 }
  0x7d   :  { %v326_v2 = vpop.permute.xlu0 %325  ;;  %v330_v3 = vpop.permute.xlu1 %329 }
  0x81   :  { %v332_v4 = vpop.permute.xlu0 %331  ;;  %v334_v5 = vpop.permute.xlu1 %333 }
  0x85   :  { %v336_v6 = vpop.permute.xlu0 %335 }
  0x88   :  { %v338_v9 = vpop.permute.xlu1 %337 }
  0x89   :  { %v340_v11 = vpop.permute.xlu0 %339 }
  0x8c   :  { %v342_v14 = vpop.permute.xlu1 %341 }
  0x8d   :  { %v344_v15 = vpop.permute.xlu0 %343 }
  0x90   :  { %v346_v16 = vpop.permute.xlu1 %345 }
  0x91   :  { %v348_v17 = vpop.permute.xlu0 %347 }
  0x94   :  { %v350_v18 = vpop.permute.xlu1 %349 }
  0x95   :  { %v352_v19 = vpop.permute.xlu0 %351 }
  0x98   :  { %v354_v20 = vpop.permute.xlu1 %353 }
  0xe6   :  { %v2068_v60 = vpop.f32.mrb[0].mxu0 }
  0xe7   :  { %v225_v61 = vpop.f32.mrb[0].mxu1  ;;  %v1511_v62 = vpop.f32.mrb[1].mxu0 }
  0xe8   :  { %v226_v63 = vadd.f32 %v1329_v58, %v225_v61  ;;  %v1530_v1 = vpop.f32.mrb[1].mxu1 }
  0xea   :  { %1550 = vmatprep.subr.mxu1 %v226_v63 }
  0xeb   :  { %1551 = vmatpush3.msra.mxu1 %v226_v63 }
  0xec   :  { %1553 = vmatmul.mubr.msk.f32.vlgmr.msra.gmra.mrb[2].mxu1 %vm355_vm2, %v326_v2  ;;  %1727 = vmatprep.subr.bf16.mxu1 %v1812_v0 }
  0xed   :  { %1555 = vmatprep.mubr.msk.f32.mxu1 %vm355_vm2, %v328_v59 }
  0xf0   :  { %1556 = vmatmul.mubr.msk.f32.gmra.mrb[4].mxu1 %vm355_vm2, %v330_v3 }
  0xf1   :  { %1558 = vmatprep.mubr.msk.f32.mxu1 %vm355_vm2, %v332_v4 }
  0xf4   :  { %1559 = vmatmul.mubr.msk.f32.gmra.mrb[6].mxu1 %vm355_vm2, %v334_v5 }
  0xf5   :  { %1561 = vmatprep.mubr.msk.f32.mxu1 %vm355_vm2, %v336_v6 }
  0xf6   :  { %v303_v10 = vpop.f32.mrb[2].mxu0 }
  0xf7   :  { %v304_v12 = vadd.f32 %v1331_v7, %v303_v10  ;;  %v1549_v13 = vpop.f32.mrb[3].mxu0 }
  0xf8   :  { %1562 = vmatmul.mubr.msk.f32.gmra.mrb[8].mxu1 %vm355_vm2, %v338_v9 }
  0xf9   :  { %1576 = vmatprep.subr.mxu0 %v304_v12  ;;  %1564 = vmatprep.mubr.msk.f32.mxu1 %vm355_vm2, %v340_v11 }
  0xfa   :  { %1577 = vmatpush3.msra.mxu0 %v304_v12 }
  0xfb   :  { %1579 = vmatmul.mubr.msk.f32.vlgmr.msra.gmra.mrb[4].mxu0 %vm355_vm2, %v326_v2  ;;  %1759 = vmatprep.subr.bf16.mxu0 %v1812_v0 }
  0xfc   :  { %1581 = vmatprep.mubr.msk.f32.mxu0 %vm355_vm2, %v328_v59  ;;  %1565 = vmatmul.mubr.msk.f32.gmra.mrb[10].mxu1 %vm355_vm2, %v342_v14 }
  0xfd   :  { %1567 = vmatprep.mubr.msk.f32.mxu1 %vm355_vm2, %v344_v15 }
  0xff   :  { %1582 = vmatmul.mubr.msk.f32.gmra.mrb[6].mxu0 %vm355_vm2, %v330_v3 }
 0x100   :  { %1584 = vmatprep.mubr.msk.f32.mxu0 %vm355_vm2, %v332_v4  ;;  %1568 = vmatmul.mubr.msk.f32.gmra.mrb[12].mxu1 %vm355_vm2, %v346_v16 }
 0x101   :  { %1570 = vmatprep.mubr.msk.f32.mxu1 %vm355_vm2, %v348_v17 }
 0x103   :  { %1585 = vmatmul.mubr.msk.f32.gmra.mrb[8].mxu0 %vm355_vm2, %v334_v5 }
 0x104   :  { %1587 = vmatprep.mubr.msk.f32.mxu0 %vm355_vm2, %v336_v6  ;;  %1571 = vmatmul.mubr.msk.f32.gmra.mrb[14].mxu1 %vm355_vm2, %v350_v18 }
 0x105   :  { %1573 = vmatprep.mubr.msk.f32.mxu1 %vm355_vm2, %v352_v19 }
 0x107   :  { %1588 = vmatmul.mubr.msk.f32.gmra.mrb[10].mxu0 %vm355_vm2, %v338_v9 }
 0x108   :  { %1590 = vmatprep.mubr.msk.f32.mxu0 %vm355_vm2, %v340_v11  ;;  %1574 = vmatmul.mubr.msk.f32.gmra.mrb[16].mxu1 %vm355_vm2, %v354_v20 }
 0x109   :  { %1634 = vmatprep.mubr.msk.f32.mxu1 %vm1813_vm0, %v1814_v8 }
 0x10b   :  { %1591 = vmatmul.mubr.msk.f32.gmra.mrb[12].mxu0 %vm355_vm2, %v342_v14 }
 0x10c   :  { %1593 = vmatprep.mubr.msk.f32.mxu0 %vm355_vm2, %v344_v15 }
 0x10f   :  { %1594 = vmatmul.mubr.msk.f32.gmra.mrb[14].mxu0 %vm355_vm2, %v346_v16 }
 0x110   :  { %1596 = vmatprep.mubr.msk.f32.mxu0 %vm355_vm2, %v348_v17 }
 0x113   :  { %1597 = vmatmul.mubr.msk.f32.gmra.mrb[16].mxu0 %vm355_vm2, %v350_v18 }
 0x114   :  { %1599 = vmatprep.mubr.msk.f32.mxu0 %vm355_vm2, %v352_v19 }
 0x117   :  { %1600 = vmatmul.mubr.msk.f32.gmra.mrb[18].mxu0 %vm355_vm2, %v354_v20 }
 0x118   :  { %1669 = vmatprep.mubr.msk.f32.mxu0 %vm1813_vm0, %v1814_v8 }
 0x1bf   :  { %v1554_v21 = vpop.f32.mrb[2].mxu1 }
 0x1c0   :  { %v534_v22 = vmul.f32 %v1554_v21, %v1924_v27  ;;  %v454_v23 = vpop.f32.mrb[3].mxu1 }
 0x1c1   :  { %v533_v26 = vmul.f32 %v454_v23, %v1910_v24 }
 0x1c3   :  { %v1728_v30 = vpack.c.bf16 %v534_v22, %v533_v26  ;;  %v1557_v31 = vpop.f32.mrb[4].mxu1 }
 0x1c4   :  { %v536_v32 = vmul.f32 %v1557_v31, %v1929_v28  ;;  %v464_v33 = vpop.f32.mrb[5].mxu1 }
 0x1c5   :  { %1730 = vmatpush3.bf16.xpose.msk.msra.mxu1 %vm2113_vm3, %v1728_v30  ;;  %v535_v35 = vmul.f32 %v464_v33, %v1915_v25 }
 0x1c6   :  { %1731 = vmatprep.subr.bf16.mxu1 %v1812_v0 }
 0x1c7   :  { %v1732_v36 = vpack.c.bf16 %v536_v32, %v535_v35  ;;  %v1560_v37 = vpop.f32.mrb[6].mxu1 }
 0x1c8   :  { %v538_v39 = vmul.f32 %v1560_v37, %v1967_v38  ;;  %v474_v41 = vpop.f32.mrb[7].mxu1 }
 0x1c9   :  { %v537_v42 = vmul.f32 %v474_v41, %v1949_v34 }
 0x1cb   :  { %v1736_v44 = vpack.c.bf16 %v538_v39, %v537_v42  ;;  %v1563_v46 = vpop.f32.mrb[8].mxu1 }
 0x1cc   :  { %v540_v47 = vmul.f32 %v1563_v46, %v1991_v43  ;;  %v484_v49 = vpop.f32.mrb[9].mxu1 }
 0x1cd   :  { %1734 = vmatpush3.bf16.xpose.msk.msra.mxu1 %vm2113_vm3, %v1732_v36  ;;  %v539_v52 = vmul.f32 %v484_v49, %v1973_v40 }
 0x1ce   :  { %v1580_v57 = vpop.f32.mrb[4].mxu0  ;;  %1735 = vmatprep.subr.bf16.mxu1 %v1812_v0 }
 0x1cf   :  { %v695_v58 = vmul.f32 %v1580_v57, %v1924_v27  ;;  %v615_v59 = vpop.f32.mrb[5].mxu0  ;;  %v1740_v61 = vpack.c.bf16 %v540_v47, %v539_v52  ;;  %v1566_v62 = vpop.f32.mrb[10].mxu1 }
 0x1d0   :  { %v694_v63 = vmul.f32 %v615_v59, %v1910_v24  ;;  %v542_v1 = vmul.f32 %v1566_v62, %v2012_v48  ;;  %v494_v2 = vpop.f32.mrb[11].mxu1 }
 0x1d1   :  { %v541_v3 = vmul.f32 %v494_v2, %v1996_v45 }
 0x1d2   :  { %v1760_v4 = vpack.c.bf16 %v695_v58, %v694_v63  ;;  %v1583_v5 = vpop.f32.mrb[6].mxu0 }
 0x1d3   :  { %v697_v6 = vmul.f32 %v1583_v5, %v1929_v28  ;;  %v625_v7 = vpop.f32.mrb[7].mxu0  ;;  %v1744_v9 = vpack.c.bf16 %v542_v1, %v541_v3  ;;  %v1569_v10 = vpop.f32.mrb[12].mxu1 }
 0x1d4   :  { %v696_v11 = vmul.f32 %v625_v7, %v1915_v25  ;;  %1761 = vmatpush3.bf16.msra.mxu0 %v1760_v4  ;;  %v2136_v27 = vmul.f32 %v1569_v10, %v2027_v51  ;;  %v504_v12 = vpop.f32.mrb[13].mxu1 }
 0x1d5   :  { %1738 = vmatpush3.bf16.xpose.msk.msra.mxu1 %vm2113_vm3, %v1736_v44  ;;  %1762 = vmatprep.subr.bf16.mxu0 %v1812_v0  ;;  %v543_v24 = vmul.f32 %v504_v12, %v2017_v50 }
 0x1d6   :  { %v1763_v13 = vpack.c.bf16 %v697_v6, %v696_v11  ;;  %v1586_v14 = vpop.f32.mrb[8].mxu0  ;;  %1739 = vmatprep.subr.bf16.mxu1 %v1812_v0 }
 0x1d7   :  { %v699_v28 = vmul.f32 %v1586_v14, %v1967_v38  ;;  %v635_v15 = vpop.f32.mrb[9].mxu0  ;;  %v1748_v25 = vpack.c.bf16 %v2136_v27, %v543_v24  ;;  %v1572_v16 = vpop.f32.mrb[14].mxu1 }
 0x1d8   :  { %v698_v17 = vmul.f32 %v635_v15, %v1949_v34  ;;  %1764 = vmatpush3.bf16.msra.mxu0 %v1763_v13  ;;  %v546_v18 = vmul.f32 %v1572_v16, %v2045_v54  ;;  %v514_v19 = vpop.f32.mrb[15].mxu1 }
 0x1d9   :  { %1765 = vmatprep.subr.bf16.mxu0 %v1812_v0  ;;  %v545_v20 = vmul.f32 %v514_v19, %v2035_v53 }
 0x1da   :  { %v1766_v21 = vpack.c.bf16 %v699_v28, %v698_v17  ;;  %v1589_v22 = vpop.f32.mrb[10].mxu0 }
 0x1db   :  { %v701_v23 = vmul.f32 %v1589_v22, %v1991_v43  ;;  %v645_v26 = vpop.f32.mrb[11].mxu0  ;;  %v1752_v38 = vpack.c.bf16 %v546_v18, %v545_v20  ;;  %v1575_v30 = vpop.f32.mrb[16].mxu1 }
 0x1dc   :  { %v700_v31 = vmul.f32 %v645_v26, %v1973_v40  ;;  %1767 = vmatpush3.bf16.msra.mxu0 %v1766_v21  ;;  %v548_v34 = vmul.f32 %v1575_v30, %v2059_v56  ;;  %v524_v32 = vpop.f32.mrb[17].mxu1 }
 0x1dd   :  { %1742 = vmatpush3.bf16.xpose.msk.msra.mxu1 %vm2113_vm3, %v1740_v61  ;;  %1768 = vmatprep.subr.bf16.mxu0 %v1812_v0  ;;  %v547_v33 = vmul.f32 %v524_v32, %v2050_v55 }
 0x1de   :  { %v1769_v35 = vpack.c.bf16 %v701_v23, %v700_v31  ;;  %v1592_v36 = vpop.f32.mrb[12].mxu0  ;;  %1743 = vmatprep.subr.bf16.mxu1 %v1812_v0 }
 0x1df   :  { %v703_v43 = vmul.f32 %v1592_v36, %v2012_v48  ;;  %v655_v37 = vpop.f32.mrb[13].mxu0  ;;  %v1756_v39 = vpack.c.bf16 %v548_v34, %v547_v33 }
 0x1e0   :  { %1770 = vmatpush3.bf16.msra.mxu0 %v1769_v35  ;;  %v702_v40 = vmul.f32 %v655_v37, %v1996_v45 }
 0x1e1   :  { %1771 = vmatprep.subr.bf16.mxu0 %v1812_v0 }
 0x1e2   :  { %v1772_v41 = vpack.c.bf16 %v703_v43, %v702_v40  ;;  %v1595_v42 = vpop.f32.mrb[14].mxu0 }
 0x1e3   :  { %v705_v44 = vmul.f32 %v1595_v42, %v2027_v51  ;;  %v665_v46 = vpop.f32.mrb[15].mxu0 }
 0x1e4   :  { %1773 = vmatpush3.bf16.msra.mxu0 %v1772_v41  ;;  %v704_v47 = vmul.f32 %v665_v46, %v2017_v50 }
 0x1e5   :  { %1746 = vmatpush3.bf16.xpose.msk.msra.mxu1 %vm2113_vm3, %v1744_v9  ;;  %1774 = vmatprep.subr.bf16.mxu0 %v1812_v0  ;;  %v839_v9 = vlaneseq }
 0x1e6   :  { %v1775_v48 = vpack.c.bf16 %v705_v44, %v704_v47  ;;  %1747 = vmatprep.subr.bf16.mxu1 %v1812_v0  ;;  %v1598_v49 = vpop.f32.mrb[16].mxu0 }
 0x1e7   :  { %v707_v45 = vmul.f32 %v1598_v49, %v2045_v54  ;;  %v675_v52 = vpop.f32.mrb[17].mxu0  ;;  %v840_v10 = vand.u32 127, %v839_v9 }
 0x1e8   :  { %1776 = vmatpush3.bf16.msra.mxu0 %v1775_v48  ;;  %v706_v57 = vmul.f32 %v675_v52, %v2035_v53  ;;  %v1327_v53 = vld [vmem:[%s2332_s3 + $0x100] ss:$0 sm:$0xff] }
 0x1e9   :  { %1777 = vmatprep.subr.bf16.mxu0 %v1812_v0  ;;  %v2191_v11 = vand.u32 7, %v840_v10 }
 0x1ea   :  { %v1778_v51 = vpack.c.bf16 %v707_v45, %v706_v57  ;;  %v1601_v58 = vpop.f32.mrb[18].mxu0 }
 0x1eb   :  { %v709_v50 = vmul.f32 %v1601_v58, %v2059_v56  ;;  %v685_v59 = vpop.f32.mrb[19].mxu0  ;;  %vm842_vm4 = vcmp.ge.s32.totalorder %v2191_v11, 1  ;;  %vm845_vm5 = vcmp.ge.s32.totalorder %v2191_v11, 2  ;;  %vm848_vm6 = vcmp.ge.s32.totalorder %v2191_v11, 4 }
 0x1ec   :  { %1779 = vmatpush3.bf16.msra.mxu0 %v1778_v51  ;;  %v708_v61 = vmul.f32 %v685_v59, %v2050_v55  ;;  %v148_v55 = vadd.f32 %v1327_v53, %v2068_v60  ;;  %v2195_v27 = vsel %vm842_vm4, 1.0, %v1814_v8  ;;  %v2201_v14 = vsel %vm845_vm5, 1.0, %v1814_v8 }
 0x1ed   :  { %1750 = vmatpush3.bf16.xpose.msk.msra.mxu1 %vm2113_vm3, %v1748_v25  ;;  %1780 = vmatprep.subr.bf16.mxu0 %v1812_v0  ;;  %v2207_v16 = vsel %vm848_vm6, 1.0, %v1814_v8  ;;  %vm875_vm7 = vcmp.eq.s32.totalorder %v2191_v11, 0  ;;  %vm1165_vm8 = vcmp.eq.s32.totalorder %v2191_v11, 7  ;;  %v48_v11 = vld [vmem:[%s2332_s3 + $0xe0] sm:$0xff] }
 0x1ee   :  { %1751 = vmatprep.subr.bf16.mxu1 %v1812_v0  ;;  %v1781_v54 = vpack.c.bf16 %v709_v50, %v708_v61  ;;  %v1386_v30 = vsel %vm875_vm7, 1.0, %v1814_v8 }
 0x1f0   :  { %1782 = vmatpush3.bf16.msra.mxu0 %v1781_v54 }
 0x1f1   :  { %1783 = vmatprep.subr.bf16.mxu0 %v1812_v0 }
 0x1f5   :  { %1754 = vmatpush3.bf16.xpose.msk.msra.mxu1 %vm2113_vm3, %v1752_v38 }
 0x1f6   :  { %1755 = vmatprep.subr.bf16.mxu1 %v1812_v0 }
 0x1fd   :  { %1758 = vmatpush3.bf16.xpose.msk.msra.mxu1 %vm2113_vm3, %v1756_v39 }
 0x204   :  { %1635 = vmatmul.mubr.msk.f32.vlgmr.msra.gmra.mrb[18].mxu1 %vm77_vm1, %v148_v55 }
 0x2d7   :  { %v827_v56 = vpop.f32.mrb[18].mxu1 }
 0x2d8   :  { %v831_v62 = vmul.f32 0.35355338, %v827_v56  ;;  %v1636_v63 = vpop.f32.mrb[19].mxu1 }
 0x2da   :  { %v832_v1 = vadd.f32 -2.0, %v831_v62 }
 0x2dc   :  { %v1382_v2 = vmul.f32 -1.442695, %v832_v1 }
 0x2de   :  { %1802 = vpow2.f32 %v1382_v2 }
 0x2e8   :  { %v1803_v3 = vpop.eup %1802 }
 0x2e9   :  { %v836_v4 = vadd.f32 1.0, %v1803_v3 }
 0x2eb   :  { %1804 = vrcp.f32 %v836_v4 }
 0x2f5   :  { %v1805_v5 = vpop.eup %1804 }
 0x2f6   :  { %v851_v6 = vsub.f32 1.0, %v1805_v5  ;;  %1321 = vst.msk [vmem:[%s2337_s5 + $0x8] sm:$0xff] %vm77_vm1, %v1805_v5 }
 0x2f7   :  { %1322 = vst.msk [vmem:[%s2337_s5 + $0x8] sm:$0xff] %vm1319_vm9, %v1814_v8 }
 0x2f8   :  { %v852_v29 = vadd.f32 1e-06, %v851_v6 }
 0x2fa   :  { %1806 = vlog2.f32 %v852_v29 }
 0x304   :  { %v1807_v60 = vpop.eup %1806 }
 0x305   :  { %v854_v7 = vmul.f32 0.6931472, %v1807_v60 }
 0x307   :  { %855 = vrot.lane.b32.xlu0 %v854_v7, %s1816_s9 }
 0x379   :  { %v856_v12 = vpop.permute.xlu0 %855 }
 0x37a   :  { %v857_v24 = vmul.f32 %v2195_v27, %v856_v12 }
 0x37c   :  { %v858_v13 = vadd.f32 %v857_v24, %v854_v7 }
 0x37e   :  { %859 = vrot.lane.b32.xlu1 %v858_v13, %s1817_s10 }
 0x3f0   :  { %v860_v28 = vpop.permute.xlu1 %859 }
 0x3f1   :  { %v861_v15 = vmul.f32 %v2201_v14, %v860_v28 }
 0x3f3   :  { %v862_v25 = vadd.f32 %v861_v15, %v858_v13 }
 0x3f5   :  { %863 = vrot.lane.b32.xlu0 %v862_v25, %s1818_s11 }
 0x467   :  { %v864_v17 = vpop.permute.xlu0 %863 }
 0x468   :  { %v865_v18 = vmul.f32 %v2207_v16, %v864_v17 }
 0x46a   :  { %v866_v19 = vadd.f32 %v865_v18, %v862_v25 }
 0x46c   :  { %v867_v20 = vsub.f32 %v866_v19, %v854_v7 }
 0x46e   :  { %v868_v21 = vadd.f32 9.999995e-07, %v867_v20 }
 0x470   :  { %v869_v22 = vmul.f32 1.442695, %v868_v21 }
 0x472   :  { %1808 = vpow2.f32 %v869_v22 }
 0x47c   :  { %v1809_v23 = vpop.eup %1808 }
 0x47d   :  { %v871_v26 = vmax.f32 %v1809_v23, 1e-06  ;;  %v2218_v41 = vmul.f32 %v1809_v23, %v1805_v5 }
 0x47f   :  { %v872_v38 = vmin.f32 %v871_v26, 1.0 }
 0x481   :  { %1810 = vrcp.f32 %v872_v38 }
 0x48b   :  { %v1811_v31 = vpop.eup %1810 }
 0x48c   :  { %v878_v34 = vmul.f32 %v1811_v31, %v1386_v30  ;;  %v2221_v47 = vrot.slane %v1811_v31, 1 }
 0x48e   :  { %879 = vrot.lane.b32.xlu1 %v878_v34, %s1816_s9 }
 0x500   :  { %v880_v32 = vpop.permute.xlu1 %879 }
 0x501   :  { %v881_v33 = vmul.f32 %v2195_v27, %v880_v32 }
 0x503   :  { %v882_v35 = vadd.f32 %v881_v33, %v878_v34 }
 0x505   :  { %883 = vrot.lane.b32.xlu0 %v882_v35, %s1817_s10 }
 0x577   :  { %v884_v36 = vpop.permute.xlu0 %883 }
 0x578   :  { %v885_v43 = vmul.f32 %v2201_v14, %v884_v36 }
 0x57a   :  { %v886_v37 = vadd.f32 %v885_v43, %v882_v35 }
 0x57c   :  { %887 = vrot.lane.b32.xlu1 %v886_v37, %s1818_s11 }
 0x5ee   :  { %v888_v39 = vpop.permute.xlu1 %887 }
 0x5ef   :  { %v889_v40 = vmul.f32 %v2207_v16, %v888_v39 }
 0x5f1   :  { %v890_v42 = vadd.f32 %v889_v40, %v886_v37 }
 0x5f3   :  { %v892_v44 = vmul.f32 %v2218_v41, %v890_v42 }
 0x5f5   :  { %v893_v46 = vmax.f32 %v892_v44, 0.0 }
 0x5f7   :  { %v894_v48 = vmin.f32 %v893_v46, 1.0 }
 0x5f9   :  { %895 = vst [vmem:[#allocation2] sm:$0x1] %v894_v48  ;;  %v899_v49 = vmul.f32 %v2221_v47, %v894_v48 }
 0x5fb   :  { %900 = vrot.lane.b32.xlu0 %v899_v49, %s1816_s9 }
 0x66d   :  { %v901_v45 = vpop.permute.xlu0 %900 }
 0x66e   :  { %v902_v52 = vmul.f32 %v2195_v27, %v901_v45 }
 0x670   :  { %v903_v57 = vadd.f32 %v902_v52, %v899_v49 }
 0x672   :  { %904 = vrot.lane.b32.xlu1 %v903_v57, %s1817_s10 }
 0x6e4   :  { %v905_v51 = vpop.permute.xlu1 %904 }
 0x6e5   :  { %v906_v58 = vmul.f32 %v2201_v14, %v905_v51 }
 0x6e7   :  { %v907_v50 = vadd.f32 %v906_v58, %v903_v57 }
 0x6e9   :  { %908 = vrot.lane.b32.xlu0 %v907_v50, %s1818_s11 }
 0x75b   :  { %v909_v59 = vpop.permute.xlu0 %908 }
 0x75c   :  { %v910_v61 = vmul.f32 %v2207_v16, %v909_v59 }
 0x75e   :  { %v911_v54 = vadd.f32 %v910_v61, %v907_v50 }
 0x760   :  { %v913_v53 = vrot.slane %v911_v54, 7 }
 0x762   :  { %v915_v55 = vmul.f32 %v913_v53, %v2218_v41 }
 0x764   :  { %v916_v56 = vmax.f32 %v915_v55, 0.0 }
 0x766   :  { %v917_v62 = vmin.f32 %v916_v56, 1.0 }
 0x768   :  { %918 = vst [vmem:[#allocation2] sm:$0x2] %v917_v62  ;;  %v919_v63 = vmul.f32 %v917_v62, %v2221_v47 }
 0x76a   :  { %v921_v1 = vrot.slane %v919_v63, 1 }
 0x76c   :  { %923 = vrot.lane.b32.xlu1 %v921_v1, %s1816_s9 }
 0x7de   :  { %v924_v2 = vpop.permute.xlu1 %923 }
 0x7df   :  { %v925_v3 = vmul.f32 %v2195_v27, %v924_v2 }
 0x7e1   :  { %v927_v4 = vrot.slane %v925_v3, 7 }
 0x7e3   :  { %v929_v5 = vadd.f32 %v927_v4, %v919_v63 }
 0x7e5   :  { %v931_v6 = vrot.slane %v929_v5, 1 }
 0x7e7   :  { %933 = vrot.lane.b32.xlu0 %v931_v6, %s1817_s10 }
 0x859   :  { %v934_v29 = vpop.permute.xlu0 %933 }
 0x85a   :  { %v935_v60 = vmul.f32 %v2201_v14, %v934_v29 }
 0x85c   :  { %v937_v7 = vrot.slane %v935_v60, 7 }
 0x85e   :  { %v939_v9 = vadd.f32 %v937_v7, %v929_v5 }
 0x860   :  { %v941_v10 = vrot.slane %v939_v9, 1 }
 0x862   :  { %943 = vrot.lane.b32.xlu1 %v941_v10, %s1818_s11 }
 0x8d4   :  { %v944_v12 = vpop.permute.xlu1 %943 }
 0x8d5   :  { %v945_v24 = vmul.f32 %v2207_v16, %v944_v12 }
 0x8d7   :  { %v947_v13 = vrot.slane %v945_v24, 7 }
 0x8d9   :  { %v949_v28 = vadd.f32 %v947_v13, %v939_v9 }
 0x8db   :  { %v951_v15 = vrot.slane %v949_v28, 7 }
 0x8dd   :  { %v953_v25 = vmul.f32 %v951_v15, %v2218_v41 }
 0x8df   :  { %v954_v17 = vmax.f32 %v953_v25, 0.0 }
 0x8e1   :  { %v955_v18 = vmin.f32 %v954_v17, 1.0 }
 0x8e3   :  { %956 = vst [vmem:[#allocation2] sm:$0x4] %v955_v18  ;;  %v957_v19 = vmul.f32 %v955_v18, %v2221_v47 }
 0x8e5   :  { %v959_v20 = vrot.slane %v957_v19, 2 }
 0x8e7   :  { %961 = vrot.lane.b32.xlu0 %v959_v20, %s1816_s9 }
 0x959   :  { %v962_v21 = vpop.permute.xlu0 %961 }
 0x95a   :  { %v963_v22 = vmul.f32 %v2195_v27, %v962_v21 }
 0x95c   :  { %v965_v23 = vrot.slane %v963_v22, 6 }
 0x95e   :  { %v967_v26 = vadd.f32 %v965_v23, %v957_v19 }
 0x960   :  { %v969_v38 = vrot.slane %v967_v26, 2 }
 0x962   :  { %971 = vrot.lane.b32.xlu1 %v969_v38, %s1817_s10 }
 0x9d4   :  { %v972_v30 = vpop.permute.xlu1 %971 }
 0x9d5   :  { %v973_v31 = vmul.f32 %v2201_v14, %v972_v30 }
 0x9d7   :  { %v975_v34 = vrot.slane %v973_v31, 6 }
 0x9d9   :  { %v977_v32 = vadd.f32 %v975_v34, %v967_v26 }
 0x9db   :  { %v979_v33 = vrot.slane %v977_v32, 2 }
 0x9dd   :  { %981 = vrot.lane.b32.xlu0 %v979_v33, %s1818_s11 }
 0xa4f   :  { %v982_v35 = vpop.permute.xlu0 %981 }
 0xa50   :  { %v983_v36 = vmul.f32 %v2207_v16, %v982_v35 }
 0xa52   :  { %v985_v43 = vrot.slane %v983_v36, 6 }
 0xa54   :  { %v987_v37 = vadd.f32 %v985_v43, %v977_v32 }
 0xa56   :  { %v989_v39 = vrot.slane %v987_v37, 7 }
 0xa58   :  { %v991_v40 = vmul.f32 %v989_v39, %v2218_v41 }
 0xa5a   :  { %v992_v42 = vmax.f32 %v991_v40, 0.0 }
 0xa5c   :  { %v993_v44 = vmin.f32 %v992_v42, 1.0 }
 0xa5e   :  { %994 = vst [vmem:[#allocation2] sm:$0x8] %v993_v44  ;;  %v995_v46 = vmul.f32 %v993_v44, %v2221_v47 }
 0xa60   :  { %v997_v48 = vrot.slane %v995_v46, 3 }
 0xa62   :  { %999 = vrot.lane.b32.xlu1 %v997_v48, %s1816_s9 }
 0xad4   :  { %v1000_v49 = vpop.permute.xlu1 %999 }
 0xad5   :  { %v1001_v45 = vmul.f32 %v2195_v27, %v1000_v49 }
 0xad7   :  { %v1003_v52 = vrot.slane %v1001_v45, 5 }
 0xad9   :  { %v1005_v57 = vadd.f32 %v1003_v52, %v995_v46 }
 0xadb   :  { %v1007_v51 = vrot.slane %v1005_v57, 3 }
 0xadd   :  { %1009 = vrot.lane.b32.xlu0 %v1007_v51, %s1817_s10 }
 0xb4f   :  { %v1010_v58 = vpop.permute.xlu0 %1009 }
 0xb50   :  { %v1011_v50 = vmul.f32 %v2201_v14, %v1010_v58 }
 0xb52   :  { %v1013_v59 = vrot.slane %v1011_v50, 5 }
 0xb54   :  { %v1015_v61 = vadd.f32 %v1013_v59, %v1005_v57 }
 0xb56   :  { %v1017_v54 = vrot.slane %v1015_v61, 3 }
 0xb58   :  { %1019 = vrot.lane.b32.xlu1 %v1017_v54, %s1818_s11 }
 0xbca   :  { %v1020_v53 = vpop.permute.xlu1 %1019 }
 0xbcb   :  { %v1021_v55 = vmul.f32 %v2207_v16, %v1020_v53 }
 0xbcd   :  { %v1023_v56 = vrot.slane %v1021_v55, 5 }
 0xbcf   :  { %v1025_v62 = vadd.f32 %v1023_v56, %v1015_v61 }
 0xbd1   :  { %v1027_v63 = vrot.slane %v1025_v62, 7 }
 0xbd3   :  { %v1029_v1 = vmul.f32 %v1027_v63, %v2218_v41 }
 0xbd5   :  { %v1030_v2 = vmax.f32 %v1029_v1, 0.0 }
 0xbd7   :  { %v1031_v3 = vmin.f32 %v1030_v2, 1.0 }
 0xbd9   :  { %1032 = vst [vmem:[#allocation2] sm:$0x10] %v1031_v3  ;;  %v1033_v4 = vmul.f32 %v1031_v3, %v2221_v47 }
 0xbdb   :  { %v1035_v5 = vrot.slane %v1033_v4, 4 }
 0xbdd   :  { %1037 = vrot.lane.b32.xlu0 %v1035_v5, %s1816_s9 }
 0xc4f   :  { %v1038_v6 = vpop.permute.xlu0 %1037 }
 0xc50   :  { %v1039_v29 = vmul.f32 %v2195_v27, %v1038_v6 }
 0xc52   :  { %v1041_v60 = vrot.slane %v1039_v29, 4 }
 0xc54   :  { %v1043_v7 = vadd.f32 %v1041_v60, %v1033_v4 }
 0xc56   :  { %v1045_v9 = vrot.slane %v1043_v7, 4 }
 0xc58   :  { %1047 = vrot.lane.b32.xlu1 %v1045_v9, %s1817_s10 }
 0xcca   :  { %v1048_v10 = vpop.permute.xlu1 %1047 }
 0xccb   :  { %v1049_v12 = vmul.f32 %v2201_v14, %v1048_v10 }
 0xccd   :  { %v1051_v24 = vrot.slane %v1049_v12, 4 }
 0xccf   :  { %v1053_v13 = vadd.f32 %v1051_v24, %v1043_v7 }
 0xcd1   :  { %v1055_v28 = vrot.slane %v1053_v13, 4 }
 0xcd3   :  { %1057 = vrot.lane.b32.xlu0 %v1055_v28, %s1818_s11 }
 0xd45   :  { %v1058_v15 = vpop.permute.xlu0 %1057 }
 0xd46   :  { %v1059_v25 = vmul.f32 %v2207_v16, %v1058_v15 }
 0xd48   :  { %v1061_v17 = vrot.slane %v1059_v25, 4 }
 0xd4a   :  { %v1063_v18 = vadd.f32 %v1061_v17, %v1053_v13  ;;  %v45_v17 = vld [vmem:[%s2332_s3 + $0xc8] sm:$0xff] }
 0xd4c   :  { %v1065_v19 = vrot.slane %v1063_v18, 7 }
 0xd4e   :  { %v1067_v20 = vmul.f32 %v1065_v19, %v2218_v41 }
 0xd50   :  { %v1068_v21 = vmax.f32 %v1067_v20, 0.0  ;;  %v47_v20 = vld [vmem:[%s2332_s3 + $0xd8] sm:$0xff] }
 0xd52   :  { %v1069_v22 = vmin.f32 %v1068_v21, 1.0 }
 0xd54   :  { %1070 = vst [vmem:[#allocation2] sm:$0x20] %v1069_v22  ;;  %v1071_v23 = vmul.f32 %v1069_v22, %v2221_v47 }
 0xd56   :  { %v1073_v26 = vrot.slane %v1071_v23, 5 }
 0xd58   :  { %1075 = vrot.lane.b32.xlu1 %v1073_v26, %s1816_s9 }
 0xdca   :  { %v1076_v38 = vpop.permute.xlu1 %1075 }
 0xdcb   :  { %v1077_v30 = vmul.f32 %v2195_v27, %v1076_v38  ;;  %v50_v38 = vld [vmem:[%s2332_s3 + $0xf0] sm:$0xff] }
 0xdcd   :  { %v1079_v31 = vrot.slane %v1077_v30, 3  ;;  %v51_v30 = vld [vmem:[%s2332_s3 + $0xf8] sm:$0xff] }
 0xdcf   :  { %v1081_v34 = vadd.f32 %v1079_v31, %v1071_v23  ;;  %v49_v23 = vld [vmem:[%s2332_s3 + $0xe8] sm:$0xff]  ;;  %v1793_v31 = vpack.c.bf16 %v51_v30, %v50_v38 }
 0xdd0   :  { %v1790_v26 = vpack.c.bf16 %v49_v23, %v48_v11 }
 0xdd1   :  { %v1083_v32 = vrot.slane %v1081_v34, 5 }
 0xdd3   :  { %1085 = vrot.lane.b32.xlu0 %v1083_v32, %s1817_s10 }
 0xe45   :  { %v1086_v33 = vpop.permute.xlu0 %1085 }
 0xe46   :  { %v1087_v35 = vmul.f32 %v2201_v14, %v1086_v33  ;;  %v1387_v33 = vld [vmem:[%s2332_s3 + $0x118] ss:$0 sm:$0xff] }
 0xe48   :  { %v1089_v36 = vrot.slane %v1087_v35, 3 }
 0xe4a   :  { %v1091_v43 = vadd.f32 %v1089_v36, %v1081_v34 }
 0xe4c   :  { %v1093_v37 = vrot.slane %v1091_v43, 5 }
 0xe4e   :  { %1095 = vrot.lane.b32.xlu1 %v1093_v37, %s1818_s11 }
 0xec0   :  { %v1096_v39 = vpop.permute.xlu1 %1095 }
 0xec1   :  { %v1097_v40 = vmul.f32 %v2207_v16, %v1096_v39 }
 0xec3   :  { %v1099_v42 = vrot.slane %v1097_v40, 3 }
 0xec5   :  { %v1101_v44 = vadd.f32 %v1099_v42, %v1091_v43 }
 0xec7   :  { %v1103_v46 = vrot.slane %v1101_v44, 7 }
 0xec9   :  { %v1105_v48 = vmul.f32 %v1103_v46, %v2218_v41 }
 0xecb   :  { %v1106_v49 = vmax.f32 %v1105_v48, 0.0 }
 0xecd   :  { %v1107_v45 = vmin.f32 %v1106_v49, 1.0 }
 0xecf   :  { %1108 = vst [vmem:[#allocation2] sm:$0x40] %v1107_v45  ;;  %v1109_v52 = vmul.f32 %v1107_v45, %v2221_v47 }
 0xed1   :  { %v1111_v57 = vrot.slane %v1109_v52, 6 }
 0xed3   :  { %1113 = vrot.lane.b32.xlu0 %v1111_v57, %s1816_s9 }
 0xf45   :  { %v1114_v51 = vpop.permute.xlu0 %1113 }
 0xf46   :  { %v1115_v58 = vmul.f32 %v2195_v27, %v1114_v51 }
 0xf48   :  { %v1117_v50 = vrot.slane %v1115_v58, 2 }
 0xf4a   :  { %v1119_v59 = vadd.f32 %v1117_v50, %v1109_v52 }
 0xf4c   :  { %v1121_v61 = vrot.slane %v1119_v59, 6 }
 0xf4e   :  { %1123 = vrot.lane.b32.xlu1 %v1121_v61, %s1817_s10 }
 0xfc0   :  { %v1124_v54 = vpop.permute.xlu1 %1123 }
 0xfc1   :  { %v1125_v53 = vmul.f32 %v2201_v14, %v1124_v54 }
 0xfc3   :  { %v1127_v55 = vrot.slane %v1125_v53, 2 }
 0xfc5   :  { %v1129_v56 = vadd.f32 %v1127_v55, %v1119_v59 }
 0xfc7   :  { %v1131_v62 = vrot.slane %v1129_v56, 6 }
 0xfc9   :  { %1133 = vrot.lane.b32.xlu0 %v1131_v62, %s1818_s11 }
0x103b   :  { %v1134_v47 = vpop.permute.xlu0 %1133 }
0x103c   :  { %v1135_v63 = vmul.f32 %v2207_v16, %v1134_v47 }
0x103e   :  { %v1137_v1 = vrot.slane %v1135_v63, 2 }
0x1040   :  { %v1139_v2 = vadd.f32 %v1137_v1, %v1129_v56 }
0x1042   :  { %v1141_v3 = vrot.slane %v1139_v2, 7 }
0x1044   :  { %v1143_v4 = vmul.f32 %v1141_v3, %v2218_v41 }
0x1046   :  { %v1144_v5 = vmax.f32 %v1143_v4, 0.0 }
0x1048   :  { %v1145_v6 = vmin.f32 %v1144_v5, 1.0 }
0x104a   :  { %1146 = vst [vmem:[#allocation2] sm:$0x80] %v1145_v6 }
0x1051   :  { %v1147_v29 = vld [vmem:[#allocation2] sm:$0xff] }
0x1052   :  { %1148 = vrot.lane.b32.xlu1 %v1147_v29, %s1816_s9 }
0x10c4   :  { %v1149_v60 = vpop.permute.xlu1 %1148 }
0x10c5   :  { %v1150_v7 = vmul.f32 %v2195_v27, %v1149_v60  ;;  %v44_v27 = vld [vmem:[%s2332_s3 + $0xc0] sm:$0xff] }
0x10c6   :  { %v1784_v19 = vpack.c.bf16 %v45_v17, %v44_v27 }
0x10c7   :  { %v1151_v9 = vadd.f32 %v1150_v7, %v1147_v29 }
0x10c9   :  { %1152 = vrot.lane.b32.xlu0 %v1151_v9, %s1817_s10 }
0x113b   :  { %v1153_v10 = vpop.permute.xlu0 %1152 }
0x113c   :  { %v1154_v12 = vmul.f32 %v2201_v14, %v1153_v10 }
0x113e   :  { %v1155_v24 = vadd.f32 %v1154_v12, %v1151_v9 }
0x1140   :  { %1156 = vrot.lane.b32.xlu1 %v1155_v24, %s1818_s11 }
0x11b2   :  { %v1157_v13 = vpop.permute.xlu1 %1156 }
0x11b3   :  { %v1158_v41 = vmul.f32 %v2207_v16, %v1157_v13  ;;  %v46_v16 = vld [vmem:[%s2332_s3 + $0xd0] sm:$0xff] }
0x11b4   :  { %v1787_v22 = vpack.c.bf16 %v47_v20, %v46_v16 }
0x11b5   :  { %v1159_v28 = vadd.f32 %v1158_v41, %v1155_v24 }
0x11b7   :  { %1160 = vrot.lane.b32.xlu0 %v1159_v28, %s1816_s9 }
0x1229   :  { %v1161_v15 = vpop.permute.xlu0 %1160 }
0x122a   :  { %v1162_v25 = vmax.f32 %v1161_v15, 0.0 }
0x122c   :  { %v1163_v14 = vmin.f32 %v1162_v25, 1.0 }
0x122e   :  { %v1164_v18 = vsub.f32 1.0, %v1163_v14 }
0x1230   :  { %v1166_v21 = vsel %vm1165_vm8, %v1164_v18, %v1147_v29 }
0x1231   :  { %1316 = vrot.lane.b32.xlu1 %v1166_v21, %s1815_s29  ;;  %1670 = vmatmul.mubr.f32.vlgmr.msra.gmra.mrb[20].mxu0 %v1166_v21 }
0x1232   :  { %1785 = vmatpush3.bf16.msra.mxu0 %v1784_v19  ;;  %1688 = vmatprep.mubr.msk.f32.mxu0 %vm1813_vm0, %v1814_v8 }
0x1233   :  { %1786 = vmatprep.subr.bf16.mxu0 %v1812_v0 }
0x1236   :  { %1788 = vmatpush3.bf16.msra.mxu0 %v1787_v22 }
0x1237   :  { %1789 = vmatprep.subr.bf16.mxu0 %v1812_v0 }
0x123a   :  { %1791 = vmatpush3.bf16.msra.mxu0 %v1790_v26 }
0x123b   :  { %1792 = vmatprep.subr.bf16.mxu0 %v1812_v0 }
0x123e   :  { %1794 = vmatpush3.bf16.msra.mxu0 %v1793_v31 }
0x12a3   :  { %v1317_v37 = vpop.permute.xlu1 %1316 }
0x1304   :  { %v1233_v34 = vpop.f32.mrb[20].mxu0 }
0x1305   :  { %v1671_v32 = vpop.f32.mrb[21].mxu0  ;;  %1689 = vmatmul.mubr.msk.f32.vlgmr.msra.gmra.mrb[22].mxu0 %vm77_vm1, %v1233_v34 }
0x13d8   :  { %v1310_v35 = vpop.f32.mrb[22].mxu0 }
0x13d9   :  { %v1311_v36 = vadd.f32 %v1387_v33, %v1310_v35  ;;  %v1690_v43 = vpop.f32.mrb[23].mxu0 }
0x13db   :  { %1314 = vst.msk [vmem:[%s2337_s5] sm:$0xff] %vm77_vm1, %v1311_v36 }
0x13dc   :  { %1320 = vst.msk [vmem:[%s2337_s5] sm:$0xff] %vm1319_vm9, %v1317_v37 }

</bundles_post_ra>
